<compile_context>
chip_gen: v7x
topology: tpu7x:2x2x1
jax: 0.10.0
libtpu: 0.0.40
codegen_flags: <defaults>
</compile_context>

<pallas_src>
import functools

import jax
import jax.numpy as jnp
from jax.experimental import pallas as pl
from jax.experimental.pallas import tpu as pltpu


def _ae_kernel(x_ref, w_ref, b1_ref, b2_ref, o_ref):
    # x_ref:  (TB, D_in)    batch tile
    # w_ref:  (D_out, D_in) lin1.weight (full, VMEM-resident, constant block index)
    # b1_ref: (1, D_out)    lin1.bias
    # b2_ref: (1, D_in)     bias2
    # o_ref:  (TB, D_in)
    x = x_ref[...]
    w = w_ref[...]

    # Encoder: x @ W.T + b1, relu.  The transpose is folded into the MXU contraction
    # (contract x dim 1 with w dim 1) instead of materializing w.T on the XLU.
    h = jax.lax.dot_general(
        x, w,
        dimension_numbers=(((1,), (1,)), ((), ())),
        preferred_element_type=jnp.float32,
    )
    h = jnp.maximum(h + b1_ref[...], 0.0)

    # Decoder (tied weights): h @ W + b2, sigmoid (exp rides the EUP slot).
    y = jnp.dot(h, w, preferred_element_type=jnp.float32) + b2_ref[...]
    o_ref[...] = jax.nn.sigmoid(y).astype(o_ref.dtype)


def _round_up(n, m):
    return ((n + m - 1) // m) * m


@functools.partial(jax.jit, static_argnames=("tb",))
def autoencodeur_forward(x, weight, bias1, bias2, *, tb=256):
    """x: (B, D_in); weight: (D_out, D_in); bias1: (D_out,); bias2: (D_in,)."""
    B, D_in = x.shape
    D_out = weight.shape[0]

    # Batch tile: MXU-aligned (multiple of 8 sublanes), capped at the sublane-rounded
    # batch so small batches still work.  Pad the batch to a multiple of the tile.
    tile = _round_up(min(tb, _round_up(B, 8)), 8)
    B_pad = _round_up(B, tile)
    if B_pad != B:
        x = jnp.pad(x, ((0, B_pad - B), (0, 0)))

    flops = 2 * 2 * B_pad * D_in * D_out  # two (B,D_in)x(D_in,D_out)-class matmuls
    bytes_accessed = 4 * (2 * B_pad * D_in + D_out * D_in + D_out + D_in)
    cost = pl.CostEstimate(
        flops=flops,
        transcendentals=B_pad * D_in,          # sigmoid exp per output element
        bytes_accessed=bytes_accessed,
    )

    out = pl.pallas_call(
        _ae_kernel,
        out_shape=jax.ShapeDtypeStruct((B_pad, D_in), jnp.float32),
        grid_spec=pltpu.PrefetchScalarGridSpec(
            num_scalar_prefetch=0,
            grid=(B_pad // tile,),
            in_specs=[
                pl.BlockSpec((tile, D_in), lambda i: (i, 0)),     # x: tiled over batch
                pl.BlockSpec((D_out, D_in), lambda i: (0, 0)),    # weight: resident (constant idx)
                pl.BlockSpec((1, D_out), lambda i: (0, 0)),       # bias1
                pl.BlockSpec((1, D_in), lambda i: (0, 0)),        # bias2
            ],
            # Lane-dense output: last dim = full D_in (>=128) -> unmasked vst.
            out_specs=pl.BlockSpec((tile, D_in), lambda i: (i, 0)),
        ),
        compiler_params=pltpu.CompilerParams(
            dimension_semantics=("parallel",),   # batch tiles shard across TCs on v7x
            vmem_limit_bytes=48 * 1024 * 1024,   # explicit budget, safe on v5e/v6e/v7x
        ),
        cost_estimate=cost,
    )(x, weight, bias1.reshape(1, D_out), bias2.reshape(1, D_in))

    return out[:B] if B_pad != B else out


def _reference(x, weight, bias1, bias2):
    h = jnp.maximum(x @ weight.T + bias1, 0.0)
    return jax.nn.sigmoid(h @ weight + bias2)


if __name__ == "__main__":
    # Small, TPU-friendly shapes consistent with Linear(input_len, output_len).
    # batch=512 with tile=256 -> grid of 2 parallel steps (uses both v7x TensorCores).
    batch, input_len, output_len = 512, 256, 128

    key = jax.random.PRNGKey(0)
    kx, kw, kb1, kb2 = jax.random.split(key, 4)

    x = jax.random.normal(kx, (batch, input_len), dtype=jnp.float32)
    weight = jax.random.normal(kw, (output_len, input_len), dtype=jnp.float32) * 0.05
    bias1 = jax.random.normal(kb1, (output_len,), dtype=jnp.float32) * 0.05
    bias2 = jax.random.normal(kb2, (input_len,), dtype=jnp.float32) * 0.05

    out = jax.block_until_ready(autoencodeur_forward(x, weight, bias1, bias2))
    ref = _reference(x, weight, bias1, bias2)
    assert out.shape == (batch, input_len)
    assert jnp.allclose(out, ref, atol=1e-5, rtol=1e-5), float(jnp.max(jnp.abs(out - ref)))

    # Non-multiple batch exercises the pad + crop path (no divisibility assert anymore).
    x_odd = x[:37]
    out_odd = jax.block_until_ready(autoencodeur_forward(x_odd, weight, bias1, bias2))
    assert out_odd.shape == (37, input_len)
    assert jnp.allclose(out_odd, ref[:37], atol=1e-5, rtol=1e-5)

    print("KERNEL_OK")
</pallas_src>

<mosaic_0001>
module attributes {stable_mosaic.version = 11 : i64} {
  func.func @_ae_kernel(%arg0: i32, %arg1: memref<256x256xf32, #tpu.memory_space<vmem>>, %arg2: memref<128x256xf32, #tpu.memory_space<vmem>>, %arg3: memref<1x128xf32, #tpu.memory_space<vmem>>, %arg4: memref<1x256xf32, #tpu.memory_space<vmem>>, %arg5: memref<256x256xf32, #tpu.memory_space<vmem>>) attributes {dimension_semantics = [#tpu.dimension_semantics<parallel>], iteration_bounds = array<i64: 2>, scalar_prefetch = 0 : i64, scratch_operands = 0 : i64, tpu.core_type = #tpu.core_type<tc>, window_params = [{transform_indices = @transform_0, window_bounds = array<i64: 256, 256>}, {pipeline_mode = #tpu.pipeline_mode<synchronous>, transform_indices = @transform_1, window_bounds = array<i64: 128, 256>}, {pipeline_mode = #tpu.pipeline_mode<synchronous>, transform_indices = @transform_2, window_bounds = array<i64: 1, 128>}, {pipeline_mode = #tpu.pipeline_mode<synchronous>, transform_indices = @transform_3, window_bounds = array<i64: 1, 256>}, {transform_indices = @transform_4, window_bounds = array<i64: 256, 256>}]} {
    %c0 = arith.constant 0 : index
    %c0_0 = arith.constant 0 : index
    %0 = vector.load %arg1[%c0, %c0_0] : memref<256x256xf32, #tpu.memory_space<vmem>>, vector<256x256xf32>
    %c0_1 = arith.constant 0 : index
    %c0_2 = arith.constant 0 : index
    %1 = vector.load %arg2[%c0_1, %c0_2] : memref<128x256xf32, #tpu.memory_space<vmem>>, vector<128x256xf32>
    %cst = arith.constant dense<0.000000e+00> : vector<256x128xf32>
    %2 = tpu.matmul %0, %1, %cst {dimension_numbers = #tpu.dot_dimension_numbers<[1], [1], [0], [0], [0, 0, 1, 0], [], []>} : vector<256x256xf32>, vector<128x256xf32>, vector<256x128xf32> -> vector<256x128xf32>
    %c0_3 = arith.constant 0 : index
    %c0_4 = arith.constant 0 : index
    %3 = vector.load %arg3[%c0_3, %c0_4] : memref<1x128xf32, #tpu.memory_space<vmem>>, vector<1x128xf32>
    %4 = vector.broadcast %3 : vector<1x128xf32> to vector<256x128xf32>
    %5 = arith.addf %2, %4 : vector<256x128xf32>
    %cst_5 = arith.constant 0.000000e+00 : f32
    %6 = vector.broadcast %cst_5 : f32 to vector<256x128xf32>
    %7 = arith.maximumf %5, %6 : vector<256x128xf32>
    %cst_6 = arith.constant dense<0.000000e+00> : vector<256x256xf32>
    %8 = tpu.matmul %7, %1, %cst_6 {dimension_numbers = #tpu.dot_dimension_numbers<[1], [0], [0], [1], [0, 0, 1, 1], [], []>} : vector<256x128xf32>, vector<128x256xf32>, vector<256x256xf32> -> vector<256x256xf32>
    %c0_7 = arith.constant 0 : index
    %c0_8 = arith.constant 0 : index
    %9 = vector.load %arg4[%c0_7, %c0_8] : memref<1x256xf32, #tpu.memory_space<vmem>>, vector<1x256xf32>
    %10 = vector.broadcast %9 : vector<1x256xf32> to vector<256x256xf32>
    %11 = arith.addf %8, %10 : vector<256x256xf32>
    %12 = arith.negf %11 : vector<256x256xf32>
    %13 = math.exp %12 : vector<256x256xf32>
    %cst_9 = arith.constant 1.000000e+00 : f32
    %14 = vector.broadcast %cst_9 : f32 to vector<256x256xf32>
    %15 = arith.addf %14, %13 : vector<256x256xf32>
    %16 = arith.divf %14, %15 : vector<256x256xf32>
    %c0_10 = arith.constant 0 : index
    %c0_11 = arith.constant 0 : index
    %17 = vector.load %arg5[%c0_10, %c0_11] : memref<256x256xf32, #tpu.memory_space<vmem>>, vector<256x256xf32>
    tpu.vector_store %arg5[%c0_10, %c0_11], %16 {strides = array<i32>} : memref<256x256xf32, #tpu.memory_space<vmem>>, vector<256x256xf32>,
    return
  }
  func.func @transform_0(%arg0: i32) -> (i32, i32) {
    %c0_i32 = arith.constant 0 : i32
    %c0_i32_0 = arith.constant 0 : i32
    return %arg0, %c0_i32 : i32, i32
  }
  func.func @transform_1(%arg0: i32) -> (i32, i32) {
    %c0_i32 = arith.constant 0 : i32
    %c0_i32_0 = arith.constant 0 : i32
    %c0_i32_1 = arith.constant 0 : i32
    return %c0_i32, %c0_i32_0 : i32, i32
  }
  func.func @transform_2(%arg0: i32) -> (i32, i32) {
    %c0_i32 = arith.constant 0 : i32
    %c0_i32_0 = arith.constant 0 : i32
    %c0_i32_1 = arith.constant 0 : i32
    return %c0_i32, %c0_i32_0 : i32, i32
  }
  func.func @transform_3(%arg0: i32) -> (i32, i32) {
    %c0_i32 = arith.constant 0 : i32
    %c0_i32_0 = arith.constant 0 : i32
    %c0_i32_1 = arith.constant 0 : i32
    return %c0_i32, %c0_i32_0 : i32, i32
  }
  func.func @transform_4(%arg0: i32) -> (i32, i32) {
    %c0_i32 = arith.constant 0 : i32
    %c0_i32_0 = arith.constant 0 : i32
    return %arg0, %c0_i32 : i32, i32
  }
}

</mosaic_0001>

<bundles_post_ra>
// kernel: autoencodeur_forward.1
= control target key start
LH: loop header
LB: loop body
LE: loop exit
PB: predicated region body
PF: predicated region fallthrough
CT: control target
= control target key end

     0   :  { %9 = vsyncpa [#allocation3], 0  ;;  %s2525_s0 = inlined_call_operand.hbm [shape: f32[512,256], index: 0, kind: input, shape index: {}]   ;;  %s2526_s1 = inlined_call_operand.hbm [shape: f32[128,256], index: 1, kind: input, shape index: {}]   ;;  %s2527_s2 = inlined_call_operand.vmem [shape: f32[1,128], index: 2, kind: input, shape index: {}]   ;;  %s2528_s3 = inlined_call_operand.vmem [shape: f32[1,256], index: 3, kind: input, shape index: {}]   ;;  %s2529_s4 = inlined_call_operand.hbm [shape: f32[512,256], index: 4, kind: output, shape index: {}]  }
   0x1   :  { %11 = vsyncpa [#allocation3 + $0x1], 0 }
   0x2   :  { %12 = vsyncpa [#allocation6], 0 }
   0x3   :  { %13 = vsyncpa [#allocation4], 0 }
   0x4   :  { %15 = vsyncpa [#allocation4 + $0x1], 0  ;;  %s2041_s15 = smov 0   ;;  %s2043_s16 = smov 0  }
   0x5   :  { %s2045_s17 = smov 0   ;;  %s2047_s18 = smov 0  }
   0x6 LB: > { %s2062_s19 = sadd.s32 4294967295, %s2006_s18   ;;  %s1409_s20 = sadd.s32 4294967294, %s2006_s18   ;;  %s2006_s18 = sphi %s2047_s18, %s2549_s18   ;;  %s2002_s17 = sphi %s2045_s17, %s2548_s17   ;;  %s1998_s16 = sphi %s2043_s16, %s2547_s16   ;;  %s1994_s15 = sphi %s2041_s15, %s2546_s15  }
   0x7   : > { %p41_p0 = scmp.ne.s32.totalorder %s1998_s16, %s1994_s15  ;;  %p2530_p1 = scmp.eq.s32.totalorder %s2062_s19, 0 }
   0x8   : > { %p134_p3 = scmp.eq.s32.totalorder %s1409_s20, 1  ;;  %p1410_p5 = scmp.ge.s32.totalorder %s2006_s18, 1 }
   0x9   : > { %p2071_p4 = por %p2530_p1, %p41_p0  ;;  %p141_p7 = scmp.lt.s32.totalorder %s2006_s18, 3 }
   0xa   : > { %p2076_p6 = por %p134_p3, %p41_p0  ;;  %s2008_s24 = smov [#allocation5]  }
   0xb   : > { %s2533_s21 = scalar_select %p2071_p4, 1, 0 }
   0xc   : > { %s2534_s22 = scalar_select %p2076_p6, 1, 0 }
   0xd   : > { %p2081_p8 = pnand %p1410_p5, %p141_p7  ;;  %s153_s25 = sshll.u32 %s2008_s24, 4  ;;  %s2085_s25 = int_to_ptr.vmem [resolvable:$true] %s153_s25 }
   0xe   : > { %s2097_s27 = sadd.s32 1, %s2006_s18   ;;  %s28_s28 = sadd.s32 1, %s2002_s17 }
   0xf   : > { %s2535_s23 = scalar_select %p2081_p8, 1, 0 }
  0x10   : > { %p1568_p9 = pneg %p2081_p8  ;;  %s25_s29 = ssub.s32 %s2006_s18, %s2097_s27 }
  0x11   : > { %s1878_s6 = scalar_lea.hbm %s2526_s1, 4096 }
  0x12   : > { %p2092_p11 = pnand %p1568_p9, %p2530_p1  ;;  %p1879_p12 = scmp.ne.s32.totalorder %s2526_s1, %s1878_s6 }
  0x13   : > { %p1885_p5 = scmp.lt.u32.totalorder %s1878_s6, %s2526_s1 }
  0x14   : > { %p1880_p13 = pneg %p2092_p11 }
  0x16   : > { %p1881_p0 = pnand %p1880_p13, %p1879_p12 }
  0x18   : > { %p1882_p3 = pneg %p1881_p0 }
  0x1a   : > { %p1887_p7 = pnand %p1885_p5, %p1882_p3 }
  0x1c   : > { %1890 = shalt.err (!%p1887_p7)
}
  0x1d   : > { %s1891_s11 = scalar_lea.vmem %s2085_s25, 4096  ;;  %p1899_p2 = scmp.lt.s32.totalorder %s2085_s25, %s2085_s25 }
  0x1e   : > { %p1892_p9 = scmp.ne.s32.totalorder %s2085_s25, %s1891_s11  ;;  %p1900_p6 = scmp.lt.s32.totalorder %s1891_s11, %s1891_s11 }
  0x20   : > { %p1894_p10 = pnand %p1892_p9, %p1880_p13  ;;  %p1901_p4 = por %p1900_p6, %p1899_p2 }
  0x22   : > { %p1895_p1 = pneg %p1894_p10 }
  0x24   : > { %p1902_p8 = pnand %p1901_p4, %p1895_p1 }
  0x26   : > { %1905 = shalt.err (!%p1902_p8)
}
  0x27   : > { %s2009_s12 = smov 256   ;;  %s2010_s13 = smov 16  }
  0x28   : > { %1571 = dma.hbm_to_vmem [thread:$0]  (!%p2092_p11), %s2526_s1, 4096, %s2085_s25, [#allocation6], %s2009_s12, %s2009_s12, %s2010_s13  }
  0x29   : > { %p26_p1 = scmp.eq.s32.totalorder %s25_s29, 0  ;;  %p35_p2 = scmp.ne.s32.totalorder %s2002_s17, %s1998_s16 }
  0x2a   : > { %p36_p4 = scmp.eq.s32.totalorder %s2006_s18, 0  ;;  %p1581_p6 = scmp.lt.s32.totalorder %s2006_s18, 2 }
  0x2b   : > { %s2131_s24 = scalar_select %p26_p1, %s2002_s17, %s28_s28  }
  0x2c   : > { %p37_p8 = por %p36_p4, %p35_p2  ;;  %p2537_p10 = scmp.eq.s32.totalorder %s2062_s19, 1 }
  0x2d   : > { %s173_s26 = sand.u32 1, %s2002_s17   ;;  %s1493_s5 = sshll.u32 %s2006_s18, 13 }
  0x2e   : > { %p2135_p12 = por %p2537_p10, %p35_p2  ;;  %s1413_s6 = sshll.u32 %s173_s26, 9 }
  0x2f   : > { %s2144_s9 = scalar_lea.hbm %s2525_s0, %s1493_s5  ;;  %s177_s25 = scalar_lea.vmem [#allocation2], %s1413_s6 }
  0x30   : > { %s185_s28 = sshll.u32 %s177_s25, 4  ;;  %p2146_p11 = pnand %p1581_p6, %p37_p8  ;;  %s2150_s28 = int_to_ptr.vmem [resolvable:$true] %s185_s28 }
  0x31   : > { %s2152_s10 = scalar_lea.sflag [#allocation3], %s173_s26  ;;  %s1906_s11 = scalar_lea.hbm %s2144_s9, 8192 }
  0x32   : > { %p1907_p13 = scmp.ne.s32.totalorder %s2144_s9, %s1906_s11  ;;  %p1908_p0 = pneg %p2146_p11 }
  0x33   : > { %s1911_s5 = scalar_lea.hbm %s2525_s0, 16384  ;;  %p1912_p7 = scmp.lt.u32.totalorder %s2144_s9, %s2525_s0 }
  0x34   : > { %p1909_p3 = pnand %p1908_p0, %p1907_p13  ;;  %p1913_p9 = scmp.lt.u32.totalorder %s1911_s5, %s1906_s11 }
  0x35   : > { %p1915_p2 = scmp.lt.u32.totalorder %s1906_s11, %s2144_s9 }
  0x36   : > { %p1910_p5 = pneg %p1909_p3  ;;  %p1914_p1 = por %p1913_p9, %p1912_p7 }
  0x38   : > { %p1916_p4 = por %p1915_p2, %p1914_p1 }
  0x3a   : > { %p1917_p6 = pnand %p1916_p4, %p1910_p5 }
  0x3c   : > { %1920 = shalt.err (!%p1917_p6)
}
  0x3d   : > { %s1921_s26 = scalar_lea.vmem %s2150_s28, 8192  ;;  %s2011_s8 = smov [#allocation2]  }
  0x3e   : > { %p1922_p8 = scmp.ne.s32.totalorder %s2150_s28, %s1921_s26  ;;  %s1926_s25 = sshll.u32 %s2011_s8, 4  ;;  %s1927_s25 = int_to_ptr.vmem [resolvable:$false] %s1926_s25 }
  0x3f   : > { %s1928_s14 = scalar_lea.vmem %s1927_s25, 16384  ;;  %p1929_p3 = scmp.lt.s32.totalorder %s2150_s28, %s1927_s25 }
  0x40   : > { %p1924_p10 = pnand %p1922_p8, %p1908_p0  ;;  %p1930_p7 = scmp.lt.s32.totalorder %s1928_s14, %s1921_s26 }
  0x42   : > { %p1925_p13 = pneg %p1924_p10  ;;  %p1931_p9 = por %p1930_p7, %p1929_p3 }
  0x44   : > { %p1932_p1 = pnand %p1931_p9, %p1925_p13 }
  0x46   : > { %1935 = shalt.err (!%p1932_p1)
}
  0x47   : > { %1575 = dma.hbm_to_vmem [thread:$0]  (!%p2146_p11), %s2144_s9, 8192, %s2150_s28, %s2152_s10, %s2009_s12, %s2009_s12, %s2010_s13  }
  0x48   : > { %p2540_p0 = scmp.ne.s32.totalorder %s2535_s23, 0 }
  0x49   : > { %s2186_s11 = sand.u32 (!%p2540_p0), 1, %s1998_s16   ;;  %p2541_p5 = scmp.ne.s32.totalorder (!%p2540_p0), %s2533_s21, 0 }
  0x4a   : > { %197 = sbr.rel (%p2540_p0) target bundleno = 750 (0x2ee), region = 36  ;;  %s1418_s20 = sshll.u32 (!%p2540_p0), %s2186_s11, 9 }
  0x4b   : > { %s200_s5 = scalar_lea.sflag (!%p2540_p0), [#allocation3], %s2186_s11  ;;  %s2192_s29 = scalar_lea.vmem (!%p2540_p0), [#allocation2], %s1418_s20 }
  0x51   : > { %1981 = dma.done.wait (%p2541_p5), %s200_s5, 8192  }
  0x52   : > { %1983 = vsyncadd (%p2541_p5), %s200_s5, 4294959104  ;;  %p2542_p11 = scmp.eq.s32.totalorder %s2062_s19, 0 }
  0x54   : > { %1985 = dma.done.wait (%p2542_p11), [#allocation6], 4096   ;;  %p2543_p2 = pmov %p2542_p11 }
  0x55   : > { %v299_v0 = vld [vmem:[#allocation5 + $0x8] sm:$0xff]  ;;  %v301_v1 = vld [vmem:[#allocation5 + $0x18] sm:$0xff]  ;;  %v298_v2 = vld [vmem:[#allocation5] sm:$0xff]  ;;  %s2358_s9 = scalar_lea.vmem [#allocation7], %s1418_s20  ;;  %s1495_s28 = sshll.u32 %s2062_s19, 13 }
  0x56   : > { %1987 = vsyncadd (%p2543_p2), [#allocation6], 4294963200  ;;  %v1496_v3 = vpack.c.bf16 %v301_v1, %v299_v0  ;;  %v300_v4 = vld [vmem:[#allocation5 + $0x10] sm:$0xff]  ;;  %v303_v5 = vld [vmem:[#allocation5 + $0x28] sm:$0xff]  ;;  %s1326_s10 = sshll.u32 %s2358_s9, 4  ;;  %s2478_s26 = scalar_lea.hbm %s2529_s4, %s1495_s28  ;;  %s2480_s10 = int_to_ptr.vmem [resolvable:$true] %s1326_s10 }
  0x57   : > { %v305_v6 = vld [vmem:[#allocation5 + $0x38] sm:$0xff]  ;;  %v1498_v7 = vpack.c.bf16 %v300_v4, %v298_v2  ;;  %v302_v9 = vld [vmem:[#allocation5 + $0x20] sm:$0xff]  ;;  %v304_v10 = vld [vmem:[#allocation5 + $0x30] sm:$0xff]  ;;  %s1312_s8 = scalar_lea.sflag [#allocation4], %s2186_s11  ;;  %s1936_s25 = scalar_lea.vmem %s2480_s10, 8192 }
  0x58   : > { %v1500_v8 = vpack.c.bf16 %v305_v6, %v303_v5  ;;  %1497 = vmatprep.subr.bf16.mxu0 %v1496_v3  ;;  %1529 = vmatprep.subr.bf16.mxu1 %v1496_v3  ;;  %v307_v11 = vld [vmem:[#allocation5 + $0x48] sm:$0xff]  ;;  %v309_v12 = vld [vmem:[#allocation5 + $0x58] sm:$0xff]  ;;  %v1502_v13 = vpack.c.bf16 %v304_v10, %v302_v9  ;;  %v306_v15 = vld [vmem:[#allocation5 + $0x40] sm:$0xff]  ;;  %p1937_p4 = scmp.ne.s32.totalorder %s2480_s10, %s1936_s25  ;;  %s2013_s19 = smov [#allocation7]  }
  0x59   : > { %1499 = vmatpush1.bf16.xpose.msra.mxu0 %v1498_v7  ;;  %1531 = vmatpush1.bf16.msra.mxu1 %v1498_v7  ;;  %v1504_v14 = vpack.c.bf16 %v309_v12, %v307_v11  ;;  %v308_v16 = vld [vmem:[#allocation5 + $0x50] sm:$0xff]  ;;  %v311_v17 = vld [vmem:[#allocation5 + $0x68] sm:$0xff]  ;;  %v313_v18 = vld [vmem:[#allocation5 + $0x78] sm:$0xff]  ;;  %s1940_s14 = sshll.u32 %s2013_s19, 4  ;;  %s1941_s14 = int_to_ptr.vmem [resolvable:$false] %s1940_s14 }
  0x5a   : > { %1501 = vmatprep.subr.bf16.mxu0 %v1500_v8  ;;  %1533 = vmatprep.subr.bf16.mxu1 %v1500_v8  ;;  %v1506_v19 = vpack.c.bf16 %v308_v16, %v306_v15  ;;  %v235_v20 = vld [vmem:[%s2192_s29 + $0x8] sm:$0xff]  ;;  %v1508_v21 = vpack.c.bf16 %v313_v18, %v311_v17  ;;  %v310_v22 = vld [vmem:[#allocation5 + $0x60] sm:$0xff]  ;;  %v312_v23 = vld [vmem:[#allocation5 + $0x70] sm:$0xff]  ;;  %p1938_p6 = pnand %p1937_p4, %p2135_p12  ;;  %s1942_s20 = scalar_lea.vmem %s1941_s14, 16384 }
  0x5b   : > { %401 = vmatprep.mubr.f32.mxu0 %v235_v20  ;;  %v315_v24 = vld [vmem:[#allocation5 + $0x88] sm:$0xff]  ;;  %v317_v25 = vld [vmem:[#allocation5 + $0x98] sm:$0xff]  ;;  %v1510_v26 = vpack.c.bf16 %v312_v23, %v310_v22  ;;  %v314_v28 = vld [vmem:[#allocation5 + $0x80] sm:$0xff]  ;;  %p1943_p10 = scmp.lt.s32.totalorder %s2480_s10, %s1941_s14  ;;  %p1944_p13 = scmp.lt.s32.totalorder %s1942_s20, %s1936_s25 }
  0x5c   : > { %v1512_v27 = vpack.c.bf16 %v317_v25, %v315_v24  ;;  %v316_v29 = vld [vmem:[#allocation5 + $0x90] sm:$0xff]  ;;  %v319_v30 = vld [vmem:[#allocation5 + $0xa8] sm:$0xff]  ;;  %v321_v31 = vld [vmem:[#allocation5 + $0xb8] sm:$0xff]  ;;  %p1939_p8 = pneg %p1938_p6 }
  0x5d   : > { %1535 = vmatpush1.bf16.msra.mxu1 %v1502_v13  ;;  %v1514_v32 = vpack.c.bf16 %v316_v29, %v314_v28  ;;  %v1516_v33 = vpack.c.bf16 %v321_v31, %v319_v30  ;;  %v318_v34 = vld [vmem:[#allocation5 + $0xa0] sm:$0xff]  ;;  %v320_v35 = vld [vmem:[#allocation5 + $0xb0] sm:$0xff]  ;;  %v323_v36 = vld [vmem:[#allocation5 + $0xc8] sm:$0xff]  ;;  %v2012_v31 = vmov 0.0   ;;  %p1945_p3 = por %p1944_p13, %p1943_p10 }
  0x5e   : > { %1537 = vmatprep.subr.bf16.mxu1 %v1504_v14  ;;  %v325_v37 = vld [vmem:[#allocation5 + $0xd8] sm:$0xff]  ;;  %v1518_v38 = vpack.c.bf16 %v320_v35, %v318_v34  ;;  %v322_v40 = vld [vmem:[#allocation5 + $0xc0] sm:$0xff]  ;;  %v324_v41 = vld [vmem:[#allocation5 + $0xd0] sm:$0xff]  ;;  %670 = vmatprep.mubr.f32.mxu1 %v2012_v31 }
  0x5f   : > { %v1520_v39 = vpack.c.bf16 %v325_v37, %v323_v36  ;;  %v327_v42 = vld [vmem:[#allocation5 + $0xe8] sm:$0xff]  ;;  %v329_v43 = vld [vmem:[#allocation5 + $0xf8] sm:$0xff]  ;;  %v1522_v44 = vpack.c.bf16 %v324_v41, %v322_v40  ;;  %v326_v46 = vld [vmem:[#allocation5 + $0xe0] sm:$0xff]  ;;  %p1946_p7 = pnand %p1945_p3, %p1939_p8 }
  0x60   : > { %v1524_v45 = vpack.c.bf16 %v329_v43, %v327_v42  ;;  %v328_v47 = vld [vmem:[#allocation5 + $0xf0] sm:$0xff]  ;;  %v234_v49 = vld [vmem:[%s2192_s29] sm:$0xff]  ;;  %v237_v50 = vld [vmem:[%s2192_s29 + $0x18] sm:$0xff] }
  0x61   : > { %1503 = vmatpush1.bf16.xpose.msra.mxu0 %v1502_v13  ;;  %1539 = vmatpush1.bf16.msra.mxu1 %v1506_v19  ;;  %v1526_v48 = vpack.c.bf16 %v328_v47, %v326_v46  ;;  %v236_v51 = vld [vmem:[%s2192_s29 + $0x10] sm:$0xff]  ;;  %v239_v52 = vld [vmem:[%s2192_s29 + $0x28] sm:$0xff]  ;;  %v238_v53 = vld [vmem:[%s2192_s29 + $0x20] sm:$0xff] }
  0x62   : > { %1505 = vmatprep.subr.bf16.mxu0 %v1504_v14  ;;  %1541 = vmatprep.subr.bf16.mxu1 %v1508_v21  ;;  %v241_v54 = vld [vmem:[%s2192_s29 + $0x38] sm:$0xff]  ;;  %v240_v55 = vld [vmem:[%s2192_s29 + $0x30] sm:$0xff]  ;;  %v243_v56 = vld [vmem:[%s2192_s29 + $0x48] sm:$0xff] }
  0x63   : > { %v242_v57 = vld [vmem:[%s2192_s29 + $0x40] sm:$0xff]  ;;  %v245_v58 = vld [vmem:[%s2192_s29 + $0x58] sm:$0xff]  ;;  %v244_v59 = vld [vmem:[%s2192_s29 + $0x50] sm:$0xff] }
  0x64   : > { %v247_v60 = vld [vmem:[%s2192_s29 + $0x68] sm:$0xff]  ;;  %v246_v61 = vld [vmem:[%s2192_s29 + $0x60] sm:$0xff]  ;;  %v249_v62 = vld [vmem:[%s2192_s29 + $0x78] sm:$0xff] }
  0x65   : > { %1543 = vmatpush1.bf16.msra.mxu1 %v1510_v26  ;;  %v248_v63 = vld [vmem:[%s2192_s29 + $0x70] sm:$0xff]  ;;  %v251_v0 = vld [vmem:[%s2192_s29 + $0x88] sm:$0xff]  ;;  %v250_v1 = vld [vmem:[%s2192_s29 + $0x80] sm:$0xff] }
  0x66   : > { %1545 = vmatprep.subr.bf16.mxu1 %v1512_v27  ;;  %v253_v2 = vld [vmem:[%s2192_s29 + $0x98] sm:$0xff]  ;;  %v252_v3 = vld [vmem:[%s2192_s29 + $0x90] sm:$0xff]  ;;  %v255_v4 = vld [vmem:[%s2192_s29 + $0xa8] sm:$0xff] }
  0x67   : > { %v254_v5 = vld [vmem:[%s2192_s29 + $0xa0] sm:$0xff]  ;;  %v257_v6 = vld [vmem:[%s2192_s29 + $0xb8] sm:$0xff]  ;;  %v256_v7 = vld [vmem:[%s2192_s29 + $0xb0] sm:$0xff] }
  0x68   : > { %v259_v8 = vld [vmem:[%s2192_s29 + $0xc8] sm:$0xff]  ;;  %v258_v9 = vld [vmem:[%s2192_s29 + $0xc0] sm:$0xff]  ;;  %v261_v10 = vld [vmem:[%s2192_s29 + $0xd8] sm:$0xff] }
  0x69   : > { %1507 = vmatpush1.bf16.xpose.msra.mxu0 %v1506_v19  ;;  %1547 = vmatpush1.bf16.msra.mxu1 %v1514_v32  ;;  %v260_v11 = vld [vmem:[%s2192_s29 + $0xd0] sm:$0xff]  ;;  %v263_v12 = vld [vmem:[%s2192_s29 + $0xe8] sm:$0xff]  ;;  %v262_v13 = vld [vmem:[%s2192_s29 + $0xe0] sm:$0xff] }
  0x6a   : > { %1509 = vmatprep.subr.bf16.mxu0 %v1508_v21  ;;  %1549 = vmatprep.subr.bf16.mxu1 %v1516_v33  ;;  %v265_v14 = vld [vmem:[%s2192_s29 + $0xf8] sm:$0xff]  ;;  %v264_v15 = vld [vmem:[%s2192_s29 + $0xf0] sm:$0xff]  ;;  %v267_v16 = vld [vmem:[%s2192_s29 + $0x108] sm:$0xff] }
  0x6b   : > { %v266_v17 = vld [vmem:[%s2192_s29 + $0x100] sm:$0xff]  ;;  %v269_v18 = vld [vmem:[%s2192_s29 + $0x118] sm:$0xff]  ;;  %v268_v19 = vld [vmem:[%s2192_s29 + $0x110] sm:$0xff] }
  0x6c   : > { %v271_v20 = vld [vmem:[%s2192_s29 + $0x128] sm:$0xff]  ;;  %v270_v21 = vld [vmem:[%s2192_s29 + $0x120] sm:$0xff]  ;;  %v273_v22 = vld [vmem:[%s2192_s29 + $0x138] sm:$0xff] }
  0x6d   : > { %1551 = vmatpush1.bf16.msra.mxu1 %v1518_v38  ;;  %v272_v23 = vld [vmem:[%s2192_s29 + $0x130] sm:$0xff]  ;;  %v275_v24 = vld [vmem:[%s2192_s29 + $0x148] sm:$0xff]  ;;  %v274_v25 = vld [vmem:[%s2192_s29 + $0x140] sm:$0xff] }
  0x6e   : > { %1553 = vmatprep.subr.bf16.mxu1 %v1520_v39  ;;  %v279_v28 = vld [vmem:[%s2192_s29 + $0x168] sm:$0xff]  ;;  %v278_v29 = vld [vmem:[%s2192_s29 + $0x160] sm:$0xff]  ;;  %v281_v30 = vld [vmem:[%s2192_s29 + $0x178] sm:$0xff] }
  0x6f   : > { %v282_v34 = vld [vmem:[%s2192_s29 + $0x180] sm:$0xff]  ;;  %v285_v35 = vld [vmem:[%s2192_s29 + $0x198] sm:$0xff]  ;;  %v284_v36 = vld [vmem:[%s2192_s29 + $0x190] sm:$0xff] }
  0x70   : > { %v287_v37 = vld [vmem:[%s2192_s29 + $0x1a8] sm:$0xff]  ;;  %v288_v40 = vld [vmem:[%s2192_s29 + $0x1b0] sm:$0xff]  ;;  %v290_v42 = vld [vmem:[%s2192_s29 + $0x1c0] sm:$0xff] }
  0x71   : > { %1511 = vmatpush1.bf16.xpose.msra.mxu0 %v1510_v26  ;;  %1555 = vmatpush1.bf16.msra.mxu1 %v1522_v44  ;;  %v277_v26 = vld [vmem:[%s2192_s29 + $0x158] sm:$0xff]  ;;  %v291_v41 = vld [vmem:[%s2192_s29 + $0x1c8] sm:$0xff]  ;;  %v294_v46 = vld [vmem:[%s2192_s29 + $0x1e0] sm:$0xff] }
  0x72   : > { %1513 = vmatprep.subr.bf16.mxu0 %v1512_v27  ;;  %1557 = vmatprep.subr.bf16.mxu1 %v1524_v45  ;;  %v276_v27 = vld [vmem:[%s2192_s29 + $0x150] sm:$0xff]  ;;  %v293_v43 = vld [vmem:[%s2192_s29 + $0x1d8] sm:$0xff] }
  0x73   : > { %v297_v47 = vld [vmem:[%s2192_s29 + $0x1f8] sm:$0xff] }
  0x75   : > { %1559 = vmatpush1.bf16.msra.mxu1 %v1526_v48 }
  0x79   : > { %1515 = vmatpush1.bf16.xpose.msra.mxu0 %v1514_v32  ;;  %v280_v32 = vld [vmem:[%s2192_s29 + $0x170] sm:$0xff] }
  0x7a   : > { %1517 = vmatprep.subr.bf16.mxu0 %v1516_v33  ;;  %v283_v33 = vld [vmem:[%s2192_s29 + $0x188] sm:$0xff] }
  0x81   : > { %1519 = vmatpush1.bf16.xpose.msra.mxu0 %v1518_v38  ;;  %v286_v38 = vld [vmem:[%s2192_s29 + $0x1a0] sm:$0xff] }
  0x82   : > { %1521 = vmatprep.subr.bf16.mxu0 %v1520_v39  ;;  %v289_v39 = vld [vmem:[%s2192_s29 + $0x1b8] sm:$0xff] }
  0x89   : > { %1523 = vmatpush1.bf16.xpose.msra.mxu0 %v1522_v44  ;;  %v292_v44 = vld [vmem:[%s2192_s29 + $0x1d0] sm:$0xff] }
  0x8a   : > { %1525 = vmatprep.subr.bf16.mxu0 %v1524_v45  ;;  %v295_v45 = vld [vmem:[%s2192_s29 + $0x1e8] sm:$0xff] }
  0x91   : > { %1527 = vmatpush1.bf16.xpose.msra.mxu0 %v1526_v48  ;;  %v296_v48 = vld [vmem:[%s2192_s29 + $0x1f0] sm:$0xff] }
  0x98   : > { %402 = vmatmul.mubr.f32.vlgmr.msra.gmra.mrb[0].mxu0 %v234_v49  ;;  %v2270_v49 = vld [vmem:[%s2527_s2] ss:$0 sm:$0xff] }
  0x99   : > { %406 = vmatprep.mubr.f32.mxu0 %v237_v50 }
  0x9c   : > { %407 = vmatmul.mubr.f32.gmra.mrb[2].mxu0 %v236_v51 }
  0x9d   : > { %411 = vmatprep.mubr.f32.mxu0 %v239_v52 }
  0xa0   : > { %412 = vmatmul.mubr.f32.gmra.mrb[4].mxu0 %v238_v53 }
  0xa1   : > { %416 = vmatprep.mubr.f32.mxu0 %v241_v54 }
  0xa4   : > { %417 = vmatmul.mubr.f32.gmra.mrb[6].mxu0 %v240_v55 }
  0xa5   : > { %421 = vmatprep.mubr.f32.mxu0 %v243_v56 }
  0xa8   : > { %422 = vmatmul.mubr.f32.gmra.mrb[8].mxu0 %v242_v57 }
  0xa9   : > { %426 = vmatprep.mubr.f32.mxu0 %v245_v58 }
  0xac   : > { %427 = vmatmul.mubr.f32.gmra.mrb[10].mxu0 %v244_v59 }
  0xad   : > { %431 = vmatprep.mubr.f32.mxu0 %v247_v60 }
  0xb0   : > { %432 = vmatmul.mubr.f32.gmra.mrb[12].mxu0 %v246_v61 }
  0xb1   : > { %436 = vmatprep.mubr.f32.mxu0 %v249_v62 }
  0xb4   : > { %437 = vmatmul.mubr.f32.gmra.mrb[14].mxu0 %v248_v63 }
  0xb5   : > { %441 = vmatprep.mubr.f32.mxu0 %v251_v0 }
  0xb8   : > { %442 = vmatmul.mubr.f32.gmra.mrb[16].mxu0 %v250_v1 }
  0xb9   : > { %446 = vmatprep.mubr.f32.mxu0 %v253_v2 }
  0xbc   : > { %447 = vmatmul.mubr.f32.gmra.mrb[18].mxu0 %v252_v3 }
  0xbd   : > { %451 = vmatprep.mubr.f32.mxu0 %v255_v4 }
  0xc0   : > { %452 = vmatmul.mubr.f32.gmra.mrb[20].mxu0 %v254_v5 }
  0xc1   : > { %456 = vmatprep.mubr.f32.mxu0 %v257_v6 }
  0xc4   : > { %457 = vmatmul.mubr.f32.gmra.mrb[22].mxu0 %v256_v7 }
  0xc5   : > { %461 = vmatprep.mubr.f32.mxu0 %v259_v8 }
  0xc8   : > { %462 = vmatmul.mubr.f32.gmra.mrb[24].mxu0 %v258_v9 }
  0xc9   : > { %466 = vmatprep.mubr.f32.mxu0 %v261_v10 }
  0xcc   : > { %467 = vmatmul.mubr.f32.gmra.mrb[26].mxu0 %v260_v11 }
  0xcd   : > { %471 = vmatprep.mubr.f32.mxu0 %v263_v12 }
  0xd0   : > { %472 = vmatmul.mubr.f32.gmra.mrb[28].mxu0 %v262_v13 }
  0xd1   : > { %476 = vmatprep.mubr.f32.mxu0 %v265_v14 }
  0xd4   : > { %477 = vmatmul.mubr.f32.gmra.mrb[30].mxu0 %v264_v15 }
  0xd5   : > { %481 = vmatprep.mubr.f32.mxu0 %v267_v16 }
  0xd8   : > { %482 = vmatmul.mubr.f32.gmra.mrb[32].mxu0 %v266_v17 }
  0xd9   : > { %486 = vmatprep.mubr.f32.mxu0 %v269_v18 }
  0xdc   : > { %487 = vmatmul.mubr.f32.gmra.mrb[34].mxu0 %v268_v19 }
  0xdd   : > { %491 = vmatprep.mubr.f32.mxu0 %v271_v20 }
  0xe0   : > { %492 = vmatmul.mubr.f32.gmra.mrb[36].mxu0 %v270_v21 }
  0xe1   : > { %496 = vmatprep.mubr.f32.mxu0 %v273_v22 }
  0xe4   : > { %497 = vmatmul.mubr.f32.gmra.mrb[38].mxu0 %v272_v23 }
  0xe5   : > { %501 = vmatprep.mubr.f32.mxu0 %v275_v24 }
  0xe8   : > { %502 = vmatmul.mubr.f32.gmra.mrb[40].mxu0 %v274_v25 }
  0xe9   : > { %506 = vmatprep.mubr.f32.mxu0 %v277_v26 }
  0xec   : > { %507 = vmatmul.mubr.f32.gmra.mrb[42].mxu0 %v276_v27 }
  0xed   : > { %511 = vmatprep.mubr.f32.mxu0 %v279_v28 }
  0xf0   : > { %512 = vmatmul.mubr.f32.gmra.mrb[44].mxu0 %v278_v29 }
  0xf1   : > { %516 = vmatprep.mubr.f32.mxu0 %v281_v30 }
  0xf4   : > { %517 = vmatmul.mubr.f32.gmra.mrb[46].mxu0 %v280_v32 }
  0xf5   : > { %521 = vmatprep.mubr.f32.mxu0 %v283_v33 }
  0xf8   : > { %522 = vmatmul.mubr.f32.gmra.mrb[48].mxu0 %v282_v34 }
  0xf9   : > { %526 = vmatprep.mubr.f32.mxu0 %v285_v35 }
  0xfc   : > { %527 = vmatmul.mubr.f32.gmra.mrb[50].mxu0 %v284_v36 }
  0xfd   : > { %531 = vmatprep.mubr.f32.mxu0 %v287_v37 }
 0x100   : > { %532 = vmatmul.mubr.f32.gmra.mrb[52].mxu0 %v286_v38 }
 0x101   : > { %536 = vmatprep.mubr.f32.mxu0 %v289_v39 }
 0x104   : > { %537 = vmatmul.mubr.f32.gmra.mrb[54].mxu0 %v288_v40 }
 0x105   : > { %541 = vmatprep.mubr.f32.mxu0 %v291_v41 }
 0x108   : > { %542 = vmatmul.mubr.f32.gmra.mrb[56].mxu0 %v290_v42 }
 0x109   : > { %546 = vmatprep.mubr.f32.mxu0 %v293_v43 }
 0x10c   : > { %547 = vmatmul.mubr.f32.gmra.mrb[58].mxu0 %v292_v44 }
 0x10d   : > { %551 = vmatprep.mubr.f32.mxu0 %v295_v45 }
 0x110   : > { %552 = vmatmul.mubr.f32.gmra.mrb[60].mxu0 %v294_v46 }
 0x111   : > { %556 = vmatprep.mubr.f32.mxu0 %v297_v47 }
 0x114   : > { %557 = vmatmul.mubr.f32.gmra.mrb[62].mxu0 %v296_v48 }
 0x16b   : > { %v403_v50 = vpop.f32.mrb[0].mxu0 }
 0x16c   : > { %v404_v51 = vadd.f32 %v2270_v49, %v403_v50  ;;  %v405_v52 = vpop.f32.mrb[1].mxu0 }
 0x16e   : > { %v562_v53 = vmax.f32 %v404_v51, 0.0 }
 0x16f   : > { %v408_v54 = vpop.f32.mrb[2].mxu0 }
 0x170   : > { %v409_v55 = vadd.f32 %v2270_v49, %v408_v54  ;;  %v410_v56 = vpop.f32.mrb[3].mxu0  ;;  %671 = vmatmul.mubr.f32.vlgmr.msra.gmra.mrb[0].mxu1 %v562_v53 }
 0x171   : > { %676 = vmatprep.mubr.f32.mxu1 %v2012_v31 }
 0x172   : > { %v563_v57 = vmax.f32 %v409_v55, 0.0 }
 0x173   : > { %v413_v58 = vpop.f32.mrb[4].mxu0 }
 0x174   : > { %v414_v59 = vadd.f32 %v2270_v49, %v413_v58  ;;  %v415_v60 = vpop.f32.mrb[5].mxu0  ;;  %677 = vmatmul.mubr.f32.gmra.mrb[2].mxu1 %v563_v57 }
 0x175   : > { %682 = vmatprep.mubr.f32.mxu1 %v2012_v31 }
 0x176   : > { %v564_v61 = vmax.f32 %v414_v59, 0.0 }
 0x177   : > { %v418_v62 = vpop.f32.mrb[6].mxu0 }
 0x178   : > { %v419_v63 = vadd.f32 %v2270_v49, %v418_v62  ;;  %v420_v0 = vpop.f32.mrb[7].mxu0  ;;  %683 = vmatmul.mubr.f32.gmra.mrb[4].mxu1 %v564_v61 }
 0x179   : > { %688 = vmatprep.mubr.f32.mxu1 %v2012_v31 }
 0x17a   : > { %v565_v1 = vmax.f32 %v419_v63, 0.0 }
 0x17b   : > { %v423_v2 = vpop.f32.mrb[8].mxu0 }
 0x17c   : > { %v424_v3 = vadd.f32 %v2270_v49, %v423_v2  ;;  %v425_v4 = vpop.f32.mrb[9].mxu0  ;;  %689 = vmatmul.mubr.f32.gmra.mrb[6].mxu1 %v565_v1 }
 0x17d   : > { %694 = vmatprep.mubr.f32.mxu1 %v2012_v31 }
 0x17e   : > { %v566_v5 = vmax.f32 %v424_v3, 0.0 }
 0x17f   : > { %v428_v6 = vpop.f32.mrb[10].mxu0 }
 0x180   : > { %v429_v7 = vadd.f32 %v2270_v49, %v428_v6  ;;  %v430_v8 = vpop.f32.mrb[11].mxu0  ;;  %695 = vmatmul.mubr.f32.gmra.mrb[8].mxu1 %v566_v5 }
 0x181   : > { %700 = vmatprep.mubr.f32.mxu1 %v2012_v31 }
 0x182   : > { %v567_v9 = vmax.f32 %v429_v7, 0.0 }
 0x183   : > { %v433_v10 = vpop.f32.mrb[12].mxu0 }
 0x184   : > { %v434_v11 = vadd.f32 %v2270_v49, %v433_v10  ;;  %v435_v12 = vpop.f32.mrb[13].mxu0  ;;  %701 = vmatmul.mubr.f32.gmra.mrb[10].mxu1 %v567_v9 }
 0x185   : > { %706 = vmatprep.mubr.f32.mxu1 %v2012_v31 }
 0x186   : > { %v568_v13 = vmax.f32 %v434_v11, 0.0 }
 0x187   : > { %v438_v14 = vpop.f32.mrb[14].mxu0 }
 0x188   : > { %v439_v15 = vadd.f32 %v2270_v49, %v438_v14  ;;  %v440_v16 = vpop.f32.mrb[15].mxu0  ;;  %707 = vmatmul.mubr.f32.gmra.mrb[12].mxu1 %v568_v13 }
 0x189   : > { %712 = vmatprep.mubr.f32.mxu1 %v2012_v31 }
 0x18a   : > { %v569_v17 = vmax.f32 %v439_v15, 0.0 }
 0x18b   : > { %v443_v18 = vpop.f32.mrb[16].mxu0 }
 0x18c   : > { %v444_v19 = vadd.f32 %v2270_v49, %v443_v18  ;;  %v445_v20 = vpop.f32.mrb[17].mxu0  ;;  %713 = vmatmul.mubr.f32.gmra.mrb[14].mxu1 %v569_v17 }
 0x18d   : > { %718 = vmatprep.mubr.f32.mxu1 %v2012_v31 }
 0x18e   : > { %v570_v21 = vmax.f32 %v444_v19, 0.0 }
 0x18f   : > { %v448_v22 = vpop.f32.mrb[18].mxu0 }
 0x190   : > { %v449_v23 = vadd.f32 %v2270_v49, %v448_v22  ;;  %v450_v24 = vpop.f32.mrb[19].mxu0  ;;  %719 = vmatmul.mubr.f32.gmra.mrb[16].mxu1 %v570_v21 }
 0x191   : > { %724 = vmatprep.mubr.f32.mxu1 %v2012_v31 }
 0x192   : > { %v571_v25 = vmax.f32 %v449_v23, 0.0 }
 0x193   : > { %v453_v26 = vpop.f32.mrb[20].mxu0 }
 0x194   : > { %v454_v27 = vadd.f32 %v2270_v49, %v453_v26  ;;  %v455_v28 = vpop.f32.mrb[21].mxu0  ;;  %725 = vmatmul.mubr.f32.gmra.mrb[18].mxu1 %v571_v25 }
 0x195   : > { %730 = vmatprep.mubr.f32.mxu1 %v2012_v31 }
 0x196   : > { %v572_v29 = vmax.f32 %v454_v27, 0.0 }
 0x197   : > { %v458_v30 = vpop.f32.mrb[22].mxu0 }
 0x198   : > { %v459_v32 = vadd.f32 %v2270_v49, %v458_v30  ;;  %v460_v33 = vpop.f32.mrb[23].mxu0  ;;  %731 = vmatmul.mubr.f32.gmra.mrb[20].mxu1 %v572_v29 }
 0x199   : > { %736 = vmatprep.mubr.f32.mxu1 %v2012_v31 }
 0x19a   : > { %v573_v34 = vmax.f32 %v459_v32, 0.0 }
 0x19b   : > { %v463_v35 = vpop.f32.mrb[24].mxu0 }
 0x19c   : > { %v464_v36 = vadd.f32 %v2270_v49, %v463_v35  ;;  %v465_v37 = vpop.f32.mrb[25].mxu0  ;;  %737 = vmatmul.mubr.f32.gmra.mrb[22].mxu1 %v573_v34 }
 0x19d   : > { %742 = vmatprep.mubr.f32.mxu1 %v2012_v31 }
 0x19e   : > { %v574_v38 = vmax.f32 %v464_v36, 0.0 }
 0x19f   : > { %v468_v39 = vpop.f32.mrb[26].mxu0 }
 0x1a0   : > { %v469_v40 = vadd.f32 %v2270_v49, %v468_v39  ;;  %v470_v41 = vpop.f32.mrb[27].mxu0  ;;  %743 = vmatmul.mubr.f32.gmra.mrb[24].mxu1 %v574_v38 }
 0x1a1   : > { %748 = vmatprep.mubr.f32.mxu1 %v2012_v31 }
 0x1a2   : > { %v575_v42 = vmax.f32 %v469_v40, 0.0 }
 0x1a3   : > { %v473_v43 = vpop.f32.mrb[28].mxu0 }
 0x1a4   : > { %v474_v44 = vadd.f32 %v2270_v49, %v473_v43  ;;  %v475_v45 = vpop.f32.mrb[29].mxu0  ;;  %749 = vmatmul.mubr.f32.gmra.mrb[26].mxu1 %v575_v42 }
 0x1a5   : > { %754 = vmatprep.mubr.f32.mxu1 %v2012_v31 }
 0x1a6   : > { %v576_v46 = vmax.f32 %v474_v44, 0.0 }
 0x1a7   : > { %v478_v47 = vpop.f32.mrb[30].mxu0 }
 0x1a8   : > { %v479_v48 = vadd.f32 %v2270_v49, %v478_v47  ;;  %v480_v50 = vpop.f32.mrb[31].mxu0  ;;  %755 = vmatmul.mubr.f32.gmra.mrb[28].mxu1 %v576_v46 }
 0x1a9   : > { %760 = vmatprep.mubr.f32.mxu1 %v2012_v31 }
 0x1aa   : > { %v577_v51 = vmax.f32 %v479_v48, 0.0 }
 0x1ab   : > { %v483_v52 = vpop.f32.mrb[32].mxu0 }
 0x1ac   : > { %v484_v53 = vadd.f32 %v2270_v49, %v483_v52  ;;  %v485_v54 = vpop.f32.mrb[33].mxu0  ;;  %761 = vmatmul.mubr.f32.gmra.mrb[30].mxu1 %v577_v51 }
 0x1ad   : > { %766 = vmatprep.mubr.f32.mxu1 %v2012_v31  ;;  %v596_v54 = vlaneseq }
 0x1ae   : > { %v578_v55 = vmax.f32 %v484_v53, 0.0 }
 0x1af   : > { %v488_v56 = vpop.f32.mrb[34].mxu0 }
 0x1b0   : > { %v489_v57 = vadd.f32 %v2270_v49, %v488_v56  ;;  %v490_v58 = vpop.f32.mrb[35].mxu0  ;;  %767 = vmatmul.mubr.f32.gmra.mrb[32].mxu1 %v578_v55  ;;  %v597_v55 = vshrl.u32 %v596_v54, 7 }
 0x1b1   : > { %772 = vmatprep.mubr.f32.mxu1 %v2012_v31 }
 0x1b2   : > { %v579_v59 = vmax.f32 %v489_v57, 0.0  ;;  %v598_v56 = vsub.s32 0, %v597_v55  ;;  %v594_v57 = vld [vmem:[%s2528_s3] sm:$0x3]  ;;  %v602_v58 = vsub.s32 1, %v597_v55 }
 0x1b3   : > { %v493_v60 = vpop.f32.mrb[36].mxu0 }
 0x1b4   : > { %v494_v61 = vadd.f32 %v2270_v49, %v493_v60  ;;  %v495_v62 = vpop.f32.mrb[37].mxu0  ;;  %773 = vmatmul.mubr.f32.gmra.mrb[34].mxu1 %v579_v59  ;;  %v2338_v59 = vrot.slane %v594_v57, %v598_v56  ;;  %v2340_v60 = vrot.slane %v594_v57, %v602_v58 }
 0x1b5   : > { %778 = vmatprep.mubr.f32.mxu1 %v2012_v31 }
 0x1b6   : > { %v580_v63 = vmax.f32 %v494_v61, 0.0 }
 0x1b7   : > { %v498_v0 = vpop.f32.mrb[38].mxu0 }
 0x1b8   : > { %v499_v1 = vadd.f32 %v2270_v49, %v498_v0  ;;  %v500_v2 = vpop.f32.mrb[39].mxu0  ;;  %779 = vmatmul.mubr.f32.gmra.mrb[36].mxu1 %v580_v63 }
 0x1b9   : > { %784 = vmatprep.mubr.f32.mxu1 %v2012_v31 }
 0x1ba   : > { %v581_v3 = vmax.f32 %v499_v1, 0.0 }
 0x1bb   : > { %v503_v4 = vpop.f32.mrb[40].mxu0 }
 0x1bc   : > { %v504_v5 = vadd.f32 %v2270_v49, %v503_v4  ;;  %v505_v6 = vpop.f32.mrb[41].mxu0  ;;  %785 = vmatmul.mubr.f32.gmra.mrb[38].mxu1 %v581_v3 }
 0x1bd   : > { %790 = vmatprep.mubr.f32.mxu1 %v2012_v31 }
 0x1be   : > { %v582_v7 = vmax.f32 %v504_v5, 0.0 }
 0x1bf   : > { %v508_v8 = vpop.f32.mrb[42].mxu0 }
 0x1c0   : > { %v509_v9 = vadd.f32 %v2270_v49, %v508_v8  ;;  %v510_v10 = vpop.f32.mrb[43].mxu0  ;;  %791 = vmatmul.mubr.f32.gmra.mrb[40].mxu1 %v582_v7 }
 0x1c1   : > { %796 = vmatprep.mubr.f32.mxu1 %v2012_v31 }
 0x1c2   : > { %v583_v11 = vmax.f32 %v509_v9, 0.0 }
 0x1c3   : > { %v513_v12 = vpop.f32.mrb[44].mxu0 }
 0x1c4   : > { %v514_v13 = vadd.f32 %v2270_v49, %v513_v12  ;;  %v515_v14 = vpop.f32.mrb[45].mxu0  ;;  %797 = vmatmul.mubr.f32.gmra.mrb[42].mxu1 %v583_v11 }
 0x1c5   : > { %802 = vmatprep.mubr.f32.mxu1 %v2012_v31 }
 0x1c6   : > { %v584_v15 = vmax.f32 %v514_v13, 0.0 }
 0x1c7   : > { %v518_v16 = vpop.f32.mrb[46].mxu0 }
 0x1c8   : > { %v519_v17 = vadd.f32 %v2270_v49, %v518_v16  ;;  %v520_v18 = vpop.f32.mrb[47].mxu0  ;;  %803 = vmatmul.mubr.f32.gmra.mrb[44].mxu1 %v584_v15 }
 0x1c9   : > { %808 = vmatprep.mubr.f32.mxu1 %v2012_v31 }
 0x1ca   : > { %v585_v19 = vmax.f32 %v519_v17, 0.0 }
 0x1cb   : > { %v523_v20 = vpop.f32.mrb[48].mxu0 }
 0x1cc   : > { %v524_v21 = vadd.f32 %v2270_v49, %v523_v20  ;;  %v525_v22 = vpop.f32.mrb[49].mxu0  ;;  %809 = vmatmul.mubr.f32.gmra.mrb[46].mxu1 %v585_v19 }
 0x1cd   : > { %814 = vmatprep.mubr.f32.mxu1 %v2012_v31 }
 0x1ce   : > { %v586_v23 = vmax.f32 %v524_v21, 0.0 }
 0x1cf   : > { %v528_v24 = vpop.f32.mrb[50].mxu0 }
 0x1d0   : > { %v529_v25 = vadd.f32 %v2270_v49, %v528_v24  ;;  %v530_v26 = vpop.f32.mrb[51].mxu0  ;;  %815 = vmatmul.mubr.f32.gmra.mrb[48].mxu1 %v586_v23 }
 0x1d1   : > { %820 = vmatprep.mubr.f32.mxu1 %v2012_v31 }
 0x1d2   : > { %v587_v27 = vmax.f32 %v529_v25, 0.0 }
 0x1d3   : > { %v533_v28 = vpop.f32.mrb[52].mxu0 }
 0x1d4   : > { %v534_v29 = vadd.f32 %v2270_v49, %v533_v28  ;;  %v535_v30 = vpop.f32.mrb[53].mxu0  ;;  %821 = vmatmul.mubr.f32.gmra.mrb[50].mxu1 %v587_v27 }
 0x1d5   : > { %826 = vmatprep.mubr.f32.mxu1 %v2012_v31 }
 0x1d6   : > { %v588_v32 = vmax.f32 %v534_v29, 0.0 }
 0x1d7   : > { %v538_v33 = vpop.f32.mrb[54].mxu0 }
 0x1d8   : > { %v539_v34 = vadd.f32 %v2270_v49, %v538_v33  ;;  %v540_v35 = vpop.f32.mrb[55].mxu0  ;;  %827 = vmatmul.mubr.f32.gmra.mrb[52].mxu1 %v588_v32 }
 0x1d9   : > { %832 = vmatprep.mubr.f32.mxu1 %v2012_v31 }
 0x1da   : > { %v589_v36 = vmax.f32 %v539_v34, 0.0 }
 0x1db   : > { %v543_v37 = vpop.f32.mrb[56].mxu0 }
 0x1dc   : > { %v544_v38 = vadd.f32 %v2270_v49, %v543_v37  ;;  %v545_v39 = vpop.f32.mrb[57].mxu0  ;;  %833 = vmatmul.mubr.f32.gmra.mrb[54].mxu1 %v589_v36 }
 0x1dd   : > { %838 = vmatprep.mubr.f32.mxu1 %v2012_v31 }
 0x1de   : > { %v590_v40 = vmax.f32 %v544_v38, 0.0 }
 0x1df   : > { %v548_v41 = vpop.f32.mrb[58].mxu0 }
 0x1e0   : > { %v549_v42 = vadd.f32 %v2270_v49, %v548_v41  ;;  %v550_v43 = vpop.f32.mrb[59].mxu0  ;;  %839 = vmatmul.mubr.f32.gmra.mrb[56].mxu1 %v590_v40 }
 0x1e1   : > { %844 = vmatprep.mubr.f32.mxu1 %v2012_v31 }
 0x1e2   : > { %v591_v44 = vmax.f32 %v549_v42, 0.0 }
 0x1e3   : > { %v553_v45 = vpop.f32.mrb[60].mxu0 }
 0x1e4   : > { %v554_v46 = vadd.f32 %v2270_v49, %v553_v45  ;;  %v555_v47 = vpop.f32.mrb[61].mxu0  ;;  %845 = vmatmul.mubr.f32.gmra.mrb[58].mxu1 %v591_v44 }
 0x1e5   : > { %850 = vmatprep.mubr.f32.mxu1 %v2012_v31 }
 0x1e6   : > { %v592_v48 = vmax.f32 %v554_v46, 0.0 }
 0x1e7   : > { %v558_v50 = vpop.f32.mrb[62].mxu0 }
 0x1e8   : > { %v559_v51 = vadd.f32 %v2270_v49, %v558_v50  ;;  %v560_v52 = vpop.f32.mrb[63].mxu0  ;;  %851 = vmatmul.mubr.f32.gmra.mrb[60].mxu1 %v592_v48 }
 0x1e9   : > { %856 = vmatprep.mubr.f32.mxu1 %v2012_v31 }
 0x1ea   : > { %v593_v53 = vmax.f32 %v559_v51, 0.0 }
 0x1ec   : > { %857 = vmatmul.mubr.f32.gmra.mrb[62].mxu1 %v593_v53 }
 0x243   : > { %v672_v61 = vpop.f32.mrb[0].mxu1 }
 0x244   : > { %v673_v49 = vadd.f32 %v672_v61, %v2338_v59  ;;  %v674_v62 = vpop.f32.mrb[1].mxu1 }
 0x245   : > { %v675_v31 = vadd.f32 %v674_v62, %v2340_v60 }
 0x246   : > { %v1422_v63 = vmul.f32 -1.442695, %v673_v49 }
 0x247   : > { %v1423_v0 = vmul.f32 -1.442695, %v675_v31  ;;  %v678_v1 = vpop.f32.mrb[2].mxu1 }
 0x248   : > { %1622 = vpow2.f32 %v1422_v63  ;;  %v679_v2 = vadd.f32 %v678_v1, %v2338_v59  ;;  %v680_v3 = vpop.f32.mrb[3].mxu1 }
 0x249   : > { %1624 = vpow2.f32 %v1423_v0  ;;  %v681_v4 = vadd.f32 %v680_v3, %v2340_v60 }
 0x24a   : > { %v1424_v5 = vmul.f32 -1.442695, %v679_v2 }
 0x24b   : > { %v1425_v6 = vmul.f32 -1.442695, %v681_v4  ;;  %v684_v7 = vpop.f32.mrb[4].mxu1 }
 0x24c   : > { %1626 = vpow2.f32 %v1424_v5  ;;  %v685_v8 = vadd.f32 %v684_v7, %v2338_v59  ;;  %v686_v9 = vpop.f32.mrb[5].mxu1 }
 0x24d   : > { %1628 = vpow2.f32 %v1425_v6  ;;  %v687_v10 = vadd.f32 %v686_v9, %v2340_v60 }
 0x24e   : > { %v1426_v11 = vmul.f32 -1.442695, %v685_v8 }
 0x24f   : > { %v1427_v12 = vmul.f32 -1.442695, %v687_v10  ;;  %v690_v13 = vpop.f32.mrb[6].mxu1 }
 0x250   : > { %1630 = vpow2.f32 %v1426_v11  ;;  %v691_v14 = vadd.f32 %v690_v13, %v2338_v59  ;;  %v692_v15 = vpop.f32.mrb[7].mxu1 }
 0x251   : > { %1632 = vpow2.f32 %v1427_v12  ;;  %v693_v16 = vadd.f32 %v692_v15, %v2340_v60 }
 0x252   : > { %v1623_v17 = vpop.eup %1622  ;;  %v1428_v18 = vmul.f32 -1.442695, %v691_v14 }
 0x253   : > { %v1625_v19 = vpop.eup %1624  ;;  %v1055_v20 = vadd.f32 1.0, %v1623_v17  ;;  %v1429_v21 = vmul.f32 -1.442695, %v693_v16  ;;  %v696_v22 = vpop.f32.mrb[8].mxu1 }
 0x254   : > { %v1056_v23 = vadd.f32 1.0, %v1625_v19  ;;  %1634 = vpow2.f32 %v1428_v18  ;;  %v697_v24 = vadd.f32 %v696_v22, %v2338_v59  ;;  %v698_v25 = vpop.f32.mrb[9].mxu1 }
 0x255   : > { %1636 = vrcp.f32 %v1055_v20  ;;  %v699_v26 = vadd.f32 %v698_v25, %v2340_v60 }
 0x256   : > { %v1627_v27 = vpop.eup %1626  ;;  %1638 = vrcp.f32 %v1056_v23  ;;  %v1430_v28 = vmul.f32 -1.442695, %v697_v24 }
 0x257   : > { %v1629_v29 = vpop.eup %1628  ;;  %v1057_v30 = vadd.f32 1.0, %v1627_v27  ;;  %1640 = vpow2.f32 %v1429_v21  ;;  %v1431_v32 = vmul.f32 -1.442695, %v699_v26  ;;  %v702_v33 = vpop.f32.mrb[10].mxu1 }
 0x258   : > { %v1058_v34 = vadd.f32 1.0, %v1629_v29  ;;  %1642 = vpow2.f32 %v1430_v28  ;;  %v703_v35 = vadd.f32 %v702_v33, %v2338_v59  ;;  %v704_v36 = vpop.f32.mrb[11].mxu1 }
 0x259   : > { %1644 = vrcp.f32 %v1057_v30  ;;  %v705_v37 = vadd.f32 %v704_v36, %v2340_v60 }
 0x25a   : > { %v1631_v38 = vpop.eup %1630  ;;  %1646 = vrcp.f32 %v1058_v34  ;;  %v1432_v39 = vmul.f32 -1.442695, %v703_v35 }
 0x25b   : > { %v1633_v40 = vpop.eup %1632  ;;  %v1059_v41 = vadd.f32 1.0, %v1631_v38  ;;  %1648 = vpow2.f32 %v1431_v32  ;;  %v1433_v42 = vmul.f32 -1.442695, %v705_v37  ;;  %v708_v43 = vpop.f32.mrb[12].mxu1 }
 0x25c   : > { %v1060_v44 = vadd.f32 1.0, %v1633_v40  ;;  %1650 = vpow2.f32 %v1432_v39  ;;  %v709_v45 = vadd.f32 %v708_v43, %v2338_v59  ;;  %v710_v46 = vpop.f32.mrb[13].mxu1 }
 0x25d   : > { %1652 = vrcp.f32 %v1059_v41  ;;  %v711_v47 = vadd.f32 %v710_v46, %v2340_v60 }
 0x25e   : > { %v1635_v48 = vpop.eup %1634  ;;  %1654 = vrcp.f32 %v1060_v44  ;;  %v1434_v50 = vmul.f32 -1.442695, %v709_v45 }
 0x25f   : > { %v1637_v51 = vpop.eup %1636  ;;  %v1061_v52 = vadd.f32 1.0, %v1635_v48  ;;  %1656 = vpow2.f32 %v1433_v42  ;;  %v1435_v53 = vmul.f32 -1.442695, %v711_v47  ;;  %v714_v54 = vpop.f32.mrb[14].mxu1 }
 0x260   : > { %v1639_v55 = vpop.eup %1638  ;;  %1247 = vst [vmem:[%s2358_s9] sm:$0xff] %v1637_v51  ;;  %1658 = vpow2.f32 %v1434_v50  ;;  %v715_v56 = vadd.f32 %v714_v54, %v2338_v59  ;;  %v716_v57 = vpop.f32.mrb[15].mxu1 }
 0x261   : > { %v1641_v58 = vpop.eup %1640  ;;  %1248 = vst [vmem:[%s2358_s9 + $0x8] sm:$0xff] %v1639_v55  ;;  %1660 = vrcp.f32 %v1061_v52  ;;  %v717_v61 = vadd.f32 %v716_v57, %v2340_v60 }
 0x262   : > { %v1643_v49 = vpop.eup %1642  ;;  %v1062_v62 = vadd.f32 1.0, %v1641_v58  ;;  %1662 = vpow2.f32 %v1435_v53  ;;  %v1436_v31 = vmul.f32 -1.442695, %v715_v56 }
 0x263   : > { %v1645_v63 = vpop.eup %1644  ;;  %v1063_v0 = vadd.f32 1.0, %v1643_v49  ;;  %v1437_v1 = vmul.f32 -1.442695, %v717_v61  ;;  %v720_v2 = vpop.f32.mrb[16].mxu1 }
 0x264   : > { %v1647_v3 = vpop.eup %1646  ;;  %1249 = vst [vmem:[%s2358_s9 + $0x10] sm:$0xff] %v1645_v63  ;;  %1664 = vrcp.f32 %v1062_v62  ;;  %v721_v4 = vadd.f32 %v720_v2, %v2338_v59  ;;  %v722_v5 = vpop.f32.mrb[17].mxu1 }
 0x265   : > { %v1649_v6 = vpop.eup %1648  ;;  %1250 = vst [vmem:[%s2358_s9 + $0x18] sm:$0xff] %v1647_v3  ;;  %1666 = vrcp.f32 %v1063_v0  ;;  %v723_v7 = vadd.f32 %v722_v5, %v2340_v60 }
 0x266   : > { %v1651_v8 = vpop.eup %1650  ;;  %v1064_v9 = vadd.f32 1.0, %v1649_v6  ;;  %1668 = vpow2.f32 %v1436_v31  ;;  %v1438_v10 = vmul.f32 -1.442695, %v721_v4 }
 0x267   : > { %v1653_v11 = vpop.eup %1652  ;;  %v1065_v12 = vadd.f32 1.0, %v1651_v8  ;;  %1670 = vpow2.f32 %v1437_v1  ;;  %v1439_v13 = vmul.f32 -1.442695, %v723_v7  ;;  %v726_v14 = vpop.f32.mrb[18].mxu1 }
 0x268   : > { %v1655_v15 = vpop.eup %1654  ;;  %1251 = vst [vmem:[%s2358_s9 + $0x20] sm:$0xff] %v1653_v11  ;;  %1672 = vrcp.f32 %v1064_v9  ;;  %v727_v16 = vadd.f32 %v726_v14, %v2338_v59  ;;  %v728_v17 = vpop.f32.mrb[19].mxu1 }
 0x269   : > { %v1657_v18 = vpop.eup %1656  ;;  %1252 = vst [vmem:[%s2358_s9 + $0x28] sm:$0xff] %v1655_v15  ;;  %1674 = vrcp.f32 %v1065_v12  ;;  %v729_v19 = vadd.f32 %v728_v17, %v2340_v60 }
 0x26a   : > { %v1659_v20 = vpop.eup %1658  ;;  %v1066_v21 = vadd.f32 1.0, %v1657_v18  ;;  %1676 = vpow2.f32 %v1438_v10  ;;  %v1440_v22 = vmul.f32 -1.442695, %v727_v16 }
 0x26b   : > { %v1661_v23 = vpop.eup %1660  ;;  %v1067_v24 = vadd.f32 1.0, %v1659_v20  ;;  %1678 = vpow2.f32 %v1439_v13  ;;  %v732_v25 = vpop.f32.mrb[20].mxu1  ;;  %v1441_v27 = vmul.f32 -1.442695, %v729_v19 }
 0x26c   : > { %v1663_v26 = vpop.eup %1662  ;;  %1253 = vst [vmem:[%s2358_s9 + $0x30] sm:$0xff] %v1661_v23  ;;  %1680 = vrcp.f32 %v1066_v21  ;;  %v733_v28 = vadd.f32 %v732_v25, %v2338_v59  ;;  %v734_v29 = vpop.f32.mrb[21].mxu1 }
 0x26d   : > { %1682 = vrcp.f32 %v1067_v24  ;;  %v1068_v30 = vadd.f32 1.0, %v1663_v26  ;;  %v735_v32 = vadd.f32 %v734_v29, %v2340_v60 }
 0x26e   : > { %v1665_v33 = vpop.eup %1664  ;;  %1684 = vpow2.f32 %v1440_v22  ;;  %v1442_v34 = vmul.f32 -1.442695, %v733_v28 }
 0x26f   : > { %v1667_v35 = vpop.eup %1666  ;;  %1254 = vst [vmem:[%s2358_s9 + $0x38] sm:$0xff] %v1665_v33  ;;  %1686 = vrcp.f32 %v1068_v30  ;;  %v1443_v36 = vmul.f32 -1.442695, %v735_v32  ;;  %v738_v37 = vpop.f32.mrb[22].mxu1 }
 0x270   : > { %v1669_v38 = vpop.eup %1668  ;;  %1255 = vst [vmem:[%s2358_s9 + $0x40] sm:$0xff] %v1667_v35  ;;  %1688 = vpow2.f32 %v1441_v27  ;;  %v739_v39 = vadd.f32 %v738_v37, %v2338_v59  ;;  %v740_v40 = vpop.f32.mrb[23].mxu1 }
 0x271   : > { %v1671_v41 = vpop.eup %1670  ;;  %v1069_v42 = vadd.f32 1.0, %v1669_v38  ;;  %1690 = vpow2.f32 %v1442_v34  ;;  %v741_v43 = vadd.f32 %v740_v40, %v2340_v60 }
 0x272   : > { %v1673_v44 = vpop.eup %1672  ;;  %v1070_v45 = vadd.f32 1.0, %v1671_v41  ;;  %1692 = vpow2.f32 %v1443_v36  ;;  %v1444_v46 = vmul.f32 -1.442695, %v739_v39 }
 0x273   : > { %v1675_v47 = vpop.eup %1674  ;;  %1256 = vst [vmem:[%s2358_s9 + $0x48] sm:$0xff] %v1673_v44  ;;  %1694 = vrcp.f32 %v1069_v42  ;;  %v1445_v48 = vmul.f32 -1.442695, %v741_v43  ;;  %v744_v50 = vpop.f32.mrb[24].mxu1 }
 0x274   : > { %v1677_v51 = vpop.eup %1676  ;;  %1257 = vst [vmem:[%s2358_s9 + $0x50] sm:$0xff] %v1675_v47  ;;  %1696 = vrcp.f32 %v1070_v45  ;;  %v745_v52 = vadd.f32 %v744_v50, %v2338_v59  ;;  %v746_v53 = vpop.f32.mrb[25].mxu1 }
 0x275   : > { %v1679_v54 = vpop.eup %1678  ;;  %v1071_v55 = vadd.f32 1.0, %v1677_v51  ;;  %1698 = vpow2.f32 %v1444_v46  ;;  %v747_v56 = vadd.f32 %v746_v53, %v2340_v60 }
 0x276   : > { %v1681_v57 = vpop.eup %1680  ;;  %v1072_v58 = vadd.f32 1.0, %v1679_v54  ;;  %1700 = vpow2.f32 %v1445_v48  ;;  %v1446_v61 = vmul.f32 -1.442695, %v745_v52 }
 0x277   : > { %v1683_v49 = vpop.eup %1682  ;;  %1258 = vst [vmem:[%s2358_s9 + $0x58] sm:$0xff] %v1681_v57  ;;  %1702 = vrcp.f32 %v1071_v55  ;;  %v1447_v62 = vmul.f32 -1.442695, %v747_v56  ;;  %v750_v31 = vpop.f32.mrb[26].mxu1 }
 0x278   : > { %v1685_v63 = vpop.eup %1684  ;;  %1259 = vst [vmem:[%s2358_s9 + $0x60] sm:$0xff] %v1683_v49  ;;  %1704 = vrcp.f32 %v1072_v58  ;;  %v751_v0 = vadd.f32 %v750_v31, %v2338_v59  ;;  %v752_v1 = vpop.f32.mrb[27].mxu1 }
 0x279   : > { %v1687_v2 = vpop.eup %1686  ;;  %v1073_v3 = vadd.f32 1.0, %v1685_v63  ;;  %1706 = vpow2.f32 %v1446_v61  ;;  %v753_v4 = vadd.f32 %v752_v1, %v2340_v60 }
 0x27a   : > { %v1689_v5 = vpop.eup %1688  ;;  %1260 = vst [vmem:[%s2358_s9 + $0x68] sm:$0xff] %v1687_v2  ;;  %1708 = vpow2.f32 %v1447_v62  ;;  %v1448_v6 = vmul.f32 -1.442695, %v751_v0 }
 0x27b   : > { %v1691_v7 = vpop.eup %1690  ;;  %1710 = vrcp.f32 %v1073_v3  ;;  %v1074_v8 = vadd.f32 1.0, %v1689_v5  ;;  %v756_v9 = vpop.f32.mrb[28].mxu1  ;;  %v1449_v12 = vmul.f32 -1.442695, %v753_v4 }
 0x27c   : > { %v1693_v10 = vpop.eup %1692  ;;  %v1075_v11 = vadd.f32 1.0, %v1691_v7  ;;  %1712 = vpow2.f32 %v1448_v6  ;;  %v757_v13 = vadd.f32 %v756_v9, %v2338_v59  ;;  %v758_v14 = vpop.f32.mrb[29].mxu1 }
 0x27d   : > { %v1695_v15 = vpop.eup %1694  ;;  %1714 = vrcp.f32 %v1074_v8  ;;  %v1076_v16 = vadd.f32 1.0, %v1693_v10  ;;  %v759_v17 = vadd.f32 %v758_v14, %v2340_v60 }
 0x27e   : > { %v1697_v18 = vpop.eup %1696  ;;  %1261 = vst [vmem:[%s2358_s9 + $0x70] sm:$0xff] %v1695_v15  ;;  %1716 = vrcp.f32 %v1075_v11  ;;  %v1450_v19 = vmul.f32 -1.442695, %v757_v13 }
 0x27f   : > { %v1699_v20 = vpop.eup %1698  ;;  %1262 = vst [vmem:[%s2358_s9 + $0x78] sm:$0xff] %v1697_v18  ;;  %1718 = vrcp.f32 %v1076_v16  ;;  %v762_v21 = vpop.f32.mrb[30].mxu1  ;;  %v1451_v24 = vmul.f32 -1.442695, %v759_v17 }
 0x280   : > { %v1701_v22 = vpop.eup %1700  ;;  %v1077_v23 = vadd.f32 1.0, %v1699_v20  ;;  %1720 = vpow2.f32 %v1449_v12  ;;  %v763_v25 = vadd.f32 %v762_v21, %v2338_v59  ;;  %v764_v26 = vpop.f32.mrb[31].mxu1 }
 0x281   : > { %v1703_v27 = vpop.eup %1702  ;;  %v1078_v28 = vadd.f32 1.0, %v1701_v22  ;;  %1722 = vpow2.f32 %v1450_v19  ;;  %v765_v29 = vadd.f32 %v764_v26, %v2340_v60 }
 0x282   : > { %v1705_v30 = vpop.eup %1704  ;;  %1263 = vst [vmem:[%s2358_s9 + $0x80] sm:$0xff] %v1703_v27  ;;  %1724 = vrcp.f32 %v1077_v23  ;;  %v1452_v32 = vmul.f32 -1.442695, %v763_v25 }
 0x283   : > { %v1707_v33 = vpop.eup %1706  ;;  %1264 = vst [vmem:[%s2358_s9 + $0x88] sm:$0xff] %v1705_v30  ;;  %1726 = vrcp.f32 %v1078_v28  ;;  %v768_v34 = vpop.f32.mrb[32].mxu1  ;;  %v1453_v37 = vmul.f32 -1.442695, %v765_v29 }
 0x284   : > { %v1709_v35 = vpop.eup %1708  ;;  %v1079_v36 = vadd.f32 1.0, %v1707_v33  ;;  %1728 = vpow2.f32 %v1451_v24  ;;  %v769_v38 = vadd.f32 %v768_v34, %v2338_v59  ;;  %v770_v39 = vpop.f32.mrb[33].mxu1 }
 0x285   : > { %v1711_v40 = vpop.eup %1710  ;;  %v1080_v41 = vadd.f32 1.0, %v1709_v35  ;;  %1730 = vpow2.f32 %v1452_v32  ;;  %v771_v42 = vadd.f32 %v770_v39, %v2340_v60 }
 0x286   : > { %v1713_v43 = vpop.eup %1712  ;;  %1265 = vst [vmem:[%s2358_s9 + $0x90] sm:$0xff] %v1711_v40  ;;  %1732 = vrcp.f32 %v1079_v36  ;;  %v1454_v44 = vmul.f32 -1.442695, %v769_v38 }
 0x287   : > { %v1715_v45 = vpop.eup %1714  ;;  %1734 = vrcp.f32 %v1080_v41  ;;  %v1081_v46 = vadd.f32 1.0, %v1713_v43  ;;  %v1455_v47 = vmul.f32 -1.442695, %v771_v42  ;;  %v774_v48 = vpop.f32.mrb[34].mxu1 }
 0x288   : > { %v1717_v50 = vpop.eup %1716  ;;  %1266 = vst [vmem:[%s2358_s9 + $0x98] sm:$0xff] %v1715_v45  ;;  %1736 = vpow2.f32 %v1453_v37  ;;  %v775_v51 = vadd.f32 %v774_v48, %v2338_v59  ;;  %v776_v52 = vpop.f32.mrb[35].mxu1 }
 0x289   : > { %v1719_v53 = vpop.eup %1718  ;;  %1267 = vst [vmem:[%s2358_s9 + $0xa0] sm:$0xff] %v1717_v50  ;;  %1738 = vrcp.f32 %v1081_v46  ;;  %v777_v54 = vadd.f32 %v776_v52, %v2340_v60 }
 0x28a   : > { %v1721_v55 = vpop.eup %1720  ;;  %1268 = vst [vmem:[%s2358_s9 + $0xa8] sm:$0xff] %v1719_v53  ;;  %1740 = vpow2.f32 %v1454_v44  ;;  %v1456_v56 = vmul.f32 -1.442695, %v775_v51 }
 0x28b   : > { %v1723_v57 = vpop.eup %1722  ;;  %v1082_v58 = vadd.f32 1.0, %v1721_v55  ;;  %1742 = vpow2.f32 %v1455_v47  ;;  %v1457_v61 = vmul.f32 -1.442695, %v777_v54  ;;  %v780_v49 = vpop.f32.mrb[36].mxu1 }
 0x28c   : > { %v1725_v62 = vpop.eup %1724  ;;  %v1083_v31 = vadd.f32 1.0, %v1723_v57  ;;  %1744 = vpow2.f32 %v1456_v56  ;;  %v781_v63 = vadd.f32 %v780_v49, %v2338_v59  ;;  %v782_v0 = vpop.f32.mrb[37].mxu1 }
 0x28d   : > { %v1727_v1 = vpop.eup %1726  ;;  %1269 = vst [vmem:[%s2358_s9 + $0xb0] sm:$0xff] %v1725_v62  ;;  %1746 = vrcp.f32 %v1082_v58  ;;  %v783_v2 = vadd.f32 %v782_v0, %v2340_v60 }
 0x28e   : > { %v1729_v3 = vpop.eup %1728  ;;  %1270 = vst [vmem:[%s2358_s9 + $0xb8] sm:$0xff] %v1727_v1  ;;  %1748 = vrcp.f32 %v1083_v31  ;;  %v1458_v4 = vmul.f32 -1.442695, %v781_v63 }
 0x28f   : > { %v1731_v5 = vpop.eup %1730  ;;  %v1084_v6 = vadd.f32 1.0, %v1729_v3  ;;  %1750 = vpow2.f32 %v1457_v61  ;;  %v1459_v7 = vmul.f32 -1.442695, %v783_v2  ;;  %v786_v8 = vpop.f32.mrb[38].mxu1 }
 0x290   : > { %v1733_v9 = vpop.eup %1732  ;;  %v1085_v10 = vadd.f32 1.0, %v1731_v5  ;;  %1752 = vpow2.f32 %v1458_v4  ;;  %v787_v11 = vadd.f32 %v786_v8, %v2338_v59  ;;  %v788_v12 = vpop.f32.mrb[39].mxu1 }
 0x291   : > { %v1735_v13 = vpop.eup %1734  ;;  %1271 = vst [vmem:[%s2358_s9 + $0xc0] sm:$0xff] %v1733_v9  ;;  %1754 = vrcp.f32 %v1084_v6  ;;  %v789_v14 = vadd.f32 %v788_v12, %v2340_v60 }
 0x292   : > { %v1737_v15 = vpop.eup %1736  ;;  %1272 = vst [vmem:[%s2358_s9 + $0xc8] sm:$0xff] %v1735_v13  ;;  %1756 = vrcp.f32 %v1085_v10  ;;  %v1460_v16 = vmul.f32 -1.442695, %v787_v11 }
 0x293   : > { %v1739_v17 = vpop.eup %1738  ;;  %v1086_v18 = vadd.f32 1.0, %v1737_v15  ;;  %1758 = vpow2.f32 %v1459_v7  ;;  %v1461_v19 = vmul.f32 -1.442695, %v789_v14  ;;  %v792_v20 = vpop.f32.mrb[40].mxu1 }
 0x294   : > { %v1741_v21 = vpop.eup %1740  ;;  %1273 = vst [vmem:[%s2358_s9 + $0xd0] sm:$0xff] %v1739_v17  ;;  %1760 = vpow2.f32 %v1460_v16  ;;  %v793_v22 = vadd.f32 %v792_v20, %v2338_v59  ;;  %v794_v23 = vpop.f32.mrb[41].mxu1 }
 0x295   : > { %v1743_v24 = vpop.eup %1742  ;;  %1762 = vrcp.f32 %v1086_v18  ;;  %v1087_v25 = vadd.f32 1.0, %v1741_v21  ;;  %v795_v26 = vadd.f32 %v794_v23, %v2340_v60 }
 0x296   : > { %v1745_v27 = vpop.eup %1744  ;;  %v1088_v28 = vadd.f32 1.0, %v1743_v24  ;;  %1764 = vpow2.f32 %v1461_v19  ;;  %v1462_v29 = vmul.f32 -1.442695, %v793_v22 }
 0x297   : > { %v1747_v30 = vpop.eup %1746  ;;  %1766 = vrcp.f32 %v1087_v25  ;;  %v1089_v32 = vadd.f32 1.0, %v1745_v27  ;;  %v1463_v33 = vmul.f32 -1.442695, %v795_v26  ;;  %v798_v34 = vpop.f32.mrb[42].mxu1 }
 0x298   : > { %v1749_v35 = vpop.eup %1748  ;;  %1274 = vst [vmem:[%s2358_s9 + $0xd8] sm:$0xff] %v1747_v30  ;;  %1768 = vrcp.f32 %v1088_v28  ;;  %v799_v36 = vadd.f32 %v798_v34, %v2338_v59  ;;  %v800_v37 = vpop.f32.mrb[43].mxu1 }
 0x299   : > { %v1751_v38 = vpop.eup %1750  ;;  %1275 = vst [vmem:[%s2358_s9 + $0xe0] sm:$0xff] %v1749_v35  ;;  %1770 = vrcp.f32 %v1089_v32  ;;  %v801_v39 = vadd.f32 %v800_v37, %v2340_v60 }
 0x29a   : > { %v1753_v40 = vpop.eup %1752  ;;  %v1090_v41 = vadd.f32 1.0, %v1751_v38  ;;  %1772 = vpow2.f32 %v1462_v29  ;;  %v1464_v42 = vmul.f32 -1.442695, %v799_v36 }
 0x29b   : > { %v1755_v43 = vpop.eup %1754  ;;  %v1091_v44 = vadd.f32 1.0, %v1753_v40  ;;  %1774 = vpow2.f32 %v1463_v33  ;;  %v1465_v45 = vmul.f32 -1.442695, %v801_v39  ;;  %v804_v46 = vpop.f32.mrb[44].mxu1 }
 0x29c   : > { %v1757_v47 = vpop.eup %1756  ;;  %1276 = vst [vmem:[%s2358_s9 + $0xe8] sm:$0xff] %v1755_v43  ;;  %1776 = vrcp.f32 %v1090_v41  ;;  %v805_v48 = vadd.f32 %v804_v46, %v2338_v59  ;;  %v806_v50 = vpop.f32.mrb[45].mxu1 }
 0x29d   : > { %v1759_v51 = vpop.eup %1758  ;;  %1277 = vst [vmem:[%s2358_s9 + $0xf0] sm:$0xff] %v1757_v47  ;;  %1778 = vrcp.f32 %v1091_v44  ;;  %v807_v52 = vadd.f32 %v806_v50, %v2340_v60 }
 0x29e   : > { %v1761_v53 = vpop.eup %1760  ;;  %v1092_v54 = vadd.f32 1.0, %v1759_v51  ;;  %1780 = vpow2.f32 %v1464_v42  ;;  %v1466_v55 = vmul.f32 -1.442695, %v805_v48 }
 0x29f   : > { %v1763_v56 = vpop.eup %1762  ;;  %v1093_v57 = vadd.f32 1.0, %v1761_v53  ;;  %1782 = vpow2.f32 %v1465_v45  ;;  %v810_v58 = vpop.f32.mrb[46].mxu1  ;;  %v1467_v49 = vmul.f32 -1.442695, %v807_v52 }
 0x2a0   : > { %v1765_v61 = vpop.eup %1764  ;;  %1278 = vst [vmem:[%s2358_s9 + $0xf8] sm:$0xff] %v1763_v56  ;;  %1784 = vrcp.f32 %v1092_v54  ;;  %v811_v62 = vadd.f32 %v810_v58, %v2338_v59  ;;  %v812_v31 = vpop.f32.mrb[47].mxu1 }
 0x2a1   : > { %v1767_v63 = vpop.eup %1766  ;;  %1786 = vrcp.f32 %v1093_v57  ;;  %v1094_v0 = vadd.f32 1.0, %v1765_v61  ;;  %v813_v1 = vadd.f32 %v812_v31, %v2340_v60 }
 0x2a2   : > { %v1769_v2 = vpop.eup %1768  ;;  %1279 = vst [vmem:[%s2358_s9 + $0x100] sm:$0xff] %v1767_v63  ;;  %1788 = vpow2.f32 %v1466_v55  ;;  %v1468_v3 = vmul.f32 -1.442695, %v811_v62 }
 0x2a3   : > { %v1771_v4 = vpop.eup %1770  ;;  %1280 = vst [vmem:[%s2358_s9 + $0x108] sm:$0xff] %v1769_v2  ;;  %1790 = vrcp.f32 %v1094_v0  ;;  %v1469_v5 = vmul.f32 -1.442695, %v813_v1  ;;  %v816_v6 = vpop.f32.mrb[48].mxu1 }
 0x2a4   : > { %v1773_v7 = vpop.eup %1772  ;;  %1281 = vst [vmem:[%s2358_s9 + $0x110] sm:$0xff] %v1771_v4  ;;  %1792 = vpow2.f32 %v1467_v49  ;;  %v817_v8 = vadd.f32 %v816_v6, %v2338_v59  ;;  %v818_v9 = vpop.f32.mrb[49].mxu1 }
 0x2a5   : > { %v1775_v10 = vpop.eup %1774  ;;  %v1095_v11 = vadd.f32 1.0, %v1773_v7  ;;  %1794 = vpow2.f32 %v1468_v3  ;;  %v819_v12 = vadd.f32 %v818_v9, %v2340_v60 }
 0x2a6   : > { %v1777_v13 = vpop.eup %1776  ;;  %v1096_v14 = vadd.f32 1.0, %v1775_v10  ;;  %1796 = vpow2.f32 %v1469_v5  ;;  %v1470_v15 = vmul.f32 -1.442695, %v817_v8 }
 0x2a7   : > { %v1779_v16 = vpop.eup %1778  ;;  %1282 = vst [vmem:[%s2358_s9 + $0x118] sm:$0xff] %v1777_v13  ;;  %1798 = vrcp.f32 %v1095_v11  ;;  %v1471_v17 = vmul.f32 -1.442695, %v819_v12  ;;  %v822_v18 = vpop.f32.mrb[50].mxu1 }
 0x2a8   : > { %v1781_v19 = vpop.eup %1780  ;;  %1283 = vst [vmem:[%s2358_s9 + $0x120] sm:$0xff] %v1779_v16  ;;  %1800 = vrcp.f32 %v1096_v14  ;;  %v823_v20 = vadd.f32 %v822_v18, %v2338_v59  ;;  %v824_v21 = vpop.f32.mrb[51].mxu1 }
 0x2a9   : > { %v1783_v22 = vpop.eup %1782  ;;  %v1097_v23 = vadd.f32 1.0, %v1781_v19  ;;  %1802 = vpow2.f32 %v1470_v15  ;;  %v825_v24 = vadd.f32 %v824_v21, %v2340_v60 }
 0x2aa   : > { %v1785_v25 = vpop.eup %1784  ;;  %v1098_v26 = vadd.f32 1.0, %v1783_v22  ;;  %1804 = vpow2.f32 %v1471_v17  ;;  %v1472_v27 = vmul.f32 -1.442695, %v823_v20 }
 0x2ab   : > { %v1787_v28 = vpop.eup %1786  ;;  %1284 = vst [vmem:[%s2358_s9 + $0x128] sm:$0xff] %v1785_v25  ;;  %1806 = vrcp.f32 %v1097_v23  ;;  %v1473_v29 = vmul.f32 -1.442695, %v825_v24  ;;  %v828_v30 = vpop.f32.mrb[52].mxu1 }
 0x2ac   : > { %v1789_v32 = vpop.eup %1788  ;;  %1285 = vst [vmem:[%s2358_s9 + $0x130] sm:$0xff] %v1787_v28  ;;  %1808 = vrcp.f32 %v1098_v26  ;;  %v829_v33 = vadd.f32 %v828_v30, %v2338_v59  ;;  %v830_v34 = vpop.f32.mrb[53].mxu1 }
 0x2ad   : > { %v1791_v35 = vpop.eup %1790  ;;  %v1099_v36 = vadd.f32 1.0, %v1789_v32  ;;  %1810 = vpow2.f32 %v1472_v27  ;;  %v831_v37 = vadd.f32 %v830_v34, %v2340_v60 }
 0x2ae   : > { %v1793_v38 = vpop.eup %1792  ;;  %1286 = vst [vmem:[%s2358_s9 + $0x138] sm:$0xff] %v1791_v35  ;;  %1812 = vpow2.f32 %v1473_v29  ;;  %v1474_v39 = vmul.f32 -1.442695, %v829_v33 }
 0x2af   : > { %v1795_v40 = vpop.eup %1794  ;;  %1814 = vrcp.f32 %v1099_v36  ;;  %v1100_v41 = vadd.f32 1.0, %v1793_v38  ;;  %v834_v42 = vpop.f32.mrb[54].mxu1  ;;  %v1475_v45 = vmul.f32 -1.442695, %v831_v37 }
 0x2b0   : > { %v1797_v43 = vpop.eup %1796  ;;  %v1101_v44 = vadd.f32 1.0, %v1795_v40  ;;  %1816 = vpow2.f32 %v1474_v39  ;;  %v835_v46 = vadd.f32 %v834_v42, %v2338_v59  ;;  %v836_v47 = vpop.f32.mrb[55].mxu1 }
 0x2b1   : > { %v1799_v48 = vpop.eup %1798  ;;  %1818 = vrcp.f32 %v1100_v41  ;;  %v1102_v50 = vadd.f32 1.0, %v1797_v43  ;;  %v837_v51 = vadd.f32 %v836_v47, %v2340_v60 }
 0x2b2   : > { %v1801_v52 = vpop.eup %1800  ;;  %1287 = vst [vmem:[%s2358_s9 + $0x140] sm:$0xff] %v1799_v48  ;;  %1820 = vrcp.f32 %v1101_v44  ;;  %v1476_v53 = vmul.f32 -1.442695, %v835_v46 }
 0x2b3   : > { %v1803_v54 = vpop.eup %1802  ;;  %1288 = vst [vmem:[%s2358_s9 + $0x148] sm:$0xff] %v1801_v52  ;;  %1822 = vrcp.f32 %v1102_v50  ;;  %v840_v55 = vpop.f32.mrb[56].mxu1  ;;  %v1477_v58 = vmul.f32 -1.442695, %v837_v51 }
 0x2b4   : > { %v1805_v56 = vpop.eup %1804  ;;  %v1103_v57 = vadd.f32 1.0, %v1803_v54  ;;  %1824 = vpow2.f32 %v1475_v45  ;;  %v841_v61 = vadd.f32 %v840_v55, %v2338_v59  ;;  %v842_v49 = vpop.f32.mrb[57].mxu1 }
 0x2b5   : > { %v1807_v62 = vpop.eup %1806  ;;  %v1104_v31 = vadd.f32 1.0, %v1805_v56  ;;  %1826 = vpow2.f32 %v1476_v53  ;;  %v843_v63 = vadd.f32 %v842_v49, %v2340_v60 }
 0x2b6   : > { %v1809_v0 = vpop.eup %1808  ;;  %1289 = vst [vmem:[%s2358_s9 + $0x150] sm:$0xff] %v1807_v62  ;;  %1828 = vrcp.f32 %v1103_v57  ;;  %v1478_v1 = vmul.f32 -1.442695, %v841_v61 }
 0x2b7   : > { %v1811_v2 = vpop.eup %1810  ;;  %1290 = vst [vmem:[%s2358_s9 + $0x158] sm:$0xff] %v1809_v0  ;;  %1830 = vrcp.f32 %v1104_v31  ;;  %v846_v3 = vpop.f32.mrb[58].mxu1  ;;  %v1479_v6 = vmul.f32 -1.442695, %v843_v63 }
 0x2b8   : > { %v1813_v4 = vpop.eup %1812  ;;  %v1105_v5 = vadd.f32 1.0, %v1811_v2  ;;  %1832 = vpow2.f32 %v1477_v58  ;;  %v847_v7 = vadd.f32 %v846_v3, %v2338_v59  ;;  %v848_v8 = vpop.f32.mrb[59].mxu1 }
 0x2b9   : > { %v1815_v9 = vpop.eup %1814  ;;  %v1106_v10 = vadd.f32 1.0, %v1813_v4  ;;  %1834 = vpow2.f32 %v1478_v1  ;;  %v849_v11 = vadd.f32 %v848_v8, %v2340_v60 }
 0x2ba   : > { %v1817_v12 = vpop.eup %1816  ;;  %1291 = vst [vmem:[%s2358_s9 + $0x160] sm:$0xff] %v1815_v9  ;;  %1836 = vrcp.f32 %v1105_v5  ;;  %v1480_v13 = vmul.f32 -1.442695, %v847_v7 }
 0x2bb   : > { %v1819_v14 = vpop.eup %1818  ;;  %1838 = vrcp.f32 %v1106_v10  ;;  %v1107_v15 = vadd.f32 1.0, %v1817_v12  ;;  %v1481_v16 = vmul.f32 -1.442695, %v849_v11  ;;  %v852_v17 = vpop.f32.mrb[60].mxu1 }
 0x2bc   : > { %v1821_v18 = vpop.eup %1820  ;;  %1292 = vst [vmem:[%s2358_s9 + $0x168] sm:$0xff] %v1819_v14  ;;  %1840 = vpow2.f32 %v1479_v6  ;;  %v853_v19 = vadd.f32 %v852_v17, %v2338_v59  ;;  %v854_v20 = vpop.f32.mrb[61].mxu1 }
 0x2bd   : > { %v1823_v21 = vpop.eup %1822  ;;  %1293 = vst [vmem:[%s2358_s9 + $0x170] sm:$0xff] %v1821_v18  ;;  %1842 = vrcp.f32 %v1107_v15  ;;  %v855_v22 = vadd.f32 %v854_v20, %v2340_v60 }
 0x2be   : > { %v1825_v23 = vpop.eup %1824  ;;  %1294 = vst [vmem:[%s2358_s9 + $0x178] sm:$0xff] %v1823_v21  ;;  %1844 = vpow2.f32 %v1480_v13  ;;  %v1482_v24 = vmul.f32 -1.442695, %v853_v19 }
 0x2bf   : > { %v1827_v25 = vpop.eup %1826  ;;  %v1108_v26 = vadd.f32 1.0, %v1825_v23  ;;  %1846 = vpow2.f32 %v1481_v16  ;;  %v1483_v27 = vmul.f32 -1.442695, %v855_v22  ;;  %v858_v28 = vpop.f32.mrb[62].mxu1 }
 0x2c0   : > { %v1829_v29 = vpop.eup %1828  ;;  %v1109_v30 = vadd.f32 1.0, %v1827_v25  ;;  %1848 = vpow2.f32 %v1482_v24  ;;  %v859_v32 = vadd.f32 %v858_v28, %v2338_v59  ;;  %v860_v33 = vpop.f32.mrb[63].mxu1 }
 0x2c1   : > { %v1831_v34 = vpop.eup %1830  ;;  %1295 = vst [vmem:[%s2358_s9 + $0x180] sm:$0xff] %v1829_v29  ;;  %1850 = vrcp.f32 %v1108_v26  ;;  %v861_v35 = vadd.f32 %v860_v33, %v2340_v60 }
 0x2c2   : > { %v1833_v36 = vpop.eup %1832  ;;  %1296 = vst [vmem:[%s2358_s9 + $0x188] sm:$0xff] %v1831_v34  ;;  %1852 = vrcp.f32 %v1109_v30  ;;  %v1484_v37 = vmul.f32 -1.442695, %v859_v32 }
 0x2c3   : > { %v1835_v38 = vpop.eup %1834  ;;  %v1110_v39 = vadd.f32 1.0, %v1833_v36  ;;  %1854 = vpow2.f32 %v1483_v27  ;;  %v1485_v40 = vmul.f32 -1.442695, %v861_v35 }
 0x2c4   : > { %v1837_v41 = vpop.eup %1836  ;;  %v1111_v42 = vadd.f32 1.0, %v1835_v38  ;;  %1856 = vpow2.f32 %v1484_v37 }
 0x2c5   : > { %v1839_v59 = vpop.eup %1838  ;;  %1297 = vst [vmem:[%s2358_s9 + $0x190] sm:$0xff] %v1837_v41  ;;  %1858 = vrcp.f32 %v1110_v39 }
 0x2c6   : > { %v1841_v43 = vpop.eup %1840  ;;  %1298 = vst [vmem:[%s2358_s9 + $0x198] sm:$0xff] %v1839_v59  ;;  %1860 = vrcp.f32 %v1111_v42 }
 0x2c7   : > { %v1843_v60 = vpop.eup %1842  ;;  %v1112_v44 = vadd.f32 1.0, %v1841_v43  ;;  %1862 = vpow2.f32 %v1485_v40 }
 0x2c8   : > { %v1845_v45 = vpop.eup %1844  ;;  %1299 = vst [vmem:[%s2358_s9 + $0x1a0] sm:$0xff] %v1843_v60 }
 0x2c9   : > { %v1847_v46 = vpop.eup %1846  ;;  %1864 = vrcp.f32 %v1112_v44  ;;  %v1113_v47 = vadd.f32 1.0, %v1845_v45 }
 0x2ca   : > { %v1849_v48 = vpop.eup %1848  ;;  %v1114_v50 = vadd.f32 1.0, %v1847_v46 }
 0x2cb   : > { %v1851_v51 = vpop.eup %1850  ;;  %1866 = vrcp.f32 %v1113_v47  ;;  %v1115_v52 = vadd.f32 1.0, %v1849_v48 }
 0x2cc   : > { %v1853_v53 = vpop.eup %1852  ;;  %1300 = vst [vmem:[%s2358_s9 + $0x1a8] sm:$0xff] %v1851_v51  ;;  %1868 = vrcp.f32 %v1114_v50 }
 0x2cd   : > { %v1855_v54 = vpop.eup %1854  ;;  %1301 = vst [vmem:[%s2358_s9 + $0x1b0] sm:$0xff] %v1853_v53  ;;  %1870 = vrcp.f32 %v1115_v52 }
 0x2ce   : > { %v1857_v55 = vpop.eup %1856  ;;  %v1116_v56 = vadd.f32 1.0, %v1855_v54 }
 0x2cf   : > { %v1859_v57 = vpop.eup %1858  ;;  %v1117_v58 = vadd.f32 1.0, %v1857_v55 }
 0x2d0   : > { %v1861_v61 = vpop.eup %1860  ;;  %1302 = vst [vmem:[%s2358_s9 + $0x1b8] sm:$0xff] %v1859_v57  ;;  %1872 = vrcp.f32 %v1116_v56 }
 0x2d1   : > { %v1863_v49 = vpop.eup %1862  ;;  %1303 = vst [vmem:[%s2358_s9 + $0x1c0] sm:$0xff] %v1861_v61  ;;  %1874 = vrcp.f32 %v1117_v58 }
 0x2d2   : > { %v1118_v62 = vadd.f32 1.0, %v1863_v49 }
 0x2d3   : > { %v1865_v31 = vpop.eup %1864 }
 0x2d4   : > { %1304 = vst [vmem:[%s2358_s9 + $0x1c8] sm:$0xff] %v1865_v31  ;;  %1876 = vrcp.f32 %v1118_v62 }
 0x2d5   : > { %v1867_v63 = vpop.eup %1866 }
 0x2d6   : > { %v1869_v0 = vpop.eup %1868  ;;  %1305 = vst [vmem:[%s2358_s9 + $0x1d0] sm:$0xff] %v1867_v63 }
 0x2d7   : > { %v1871_v1 = vpop.eup %1870  ;;  %1306 = vst [vmem:[%s2358_s9 + $0x1d8] sm:$0xff] %v1869_v0 }
 0x2d8   : > { %1307 = vst [vmem:[%s2358_s9 + $0x1e0] sm:$0xff] %v1871_v1 }
 0x2da   : > { %v1873_v2 = vpop.eup %1872 }
 0x2db   : > { %v1875_v3 = vpop.eup %1874  ;;  %1308 = vst [vmem:[%s2358_s9 + $0x1e8] sm:$0xff] %v1873_v2 }
 0x2dc   : > { %1309 = vst [vmem:[%s2358_s9 + $0x1f0] sm:$0xff] %v1875_v3 }
 0x2de   : > { %v1877_v4 = vpop.eup %1876 }
 0x2df   : > { %1310 = vst [vmem:[%s2358_s9 + $0x1f8] sm:$0xff] %v1877_v4 }
 0x2e0   : > { %1949 = shalt.err (!%p1946_p7)
}
 0x2e1   : > { %s1950_s5 = scalar_lea.hbm %s2478_s26, 8192  ;;  %s1954_s23 = scalar_lea.hbm %s2529_s4, 16384 }
 0x2e2   : > { %p1951_p9 = scmp.ne.s32.totalorder %s2478_s26, %s1950_s5  ;;  %p1955_p5 = scmp.lt.u32.totalorder %s2478_s26, %s2529_s4 }
 0x2e3   : > { %p1956_p11 = scmp.lt.u32.totalorder %s1954_s23, %s1950_s5  ;;  %p1958_p4 = scmp.lt.u32.totalorder %s1950_s5, %s2478_s26 }
 0x2e4   : > { %p1952_p1 = pnand %p1951_p9, %p2135_p12 }
 0x2e5   : > { %p1957_p2 = por %p1956_p11, %p1955_p5 }
 0x2e6   : > { %p1953_p0 = pneg %p1952_p1 }
 0x2e7   : > { %p1959_p6 = por %p1958_p4, %p1957_p2 }
 0x2e9   : > { %p1960_p8 = pnand %p1959_p6, %p1953_p0 }
 0x2eb   : > { %1963 = shalt.err (!%p1960_p8)
}
 0x2ec   : > { %s2014_s9 = smov 256   ;;  %s2015_s28 = smov 16  }
 0x2ed   : > { %1566 = dma.vmem_to_hbm [thread:$0]  (%p2135_p12), %s2480_s10, 8192, %s2478_s26, %s1312_s8, %s2014_s9, %s2014_s9, %s2015_s28  }
 0x2ee PF: > { %s1341_s6 = sand.u32 1, %s1994_s15   ;;  %p2544_p10 = scmp.ne.s32.totalorder %s2534_s22, 0 }
 0x2ef   : > { %p2545_p13 = scmp.ge.s32.totalorder %s2006_s18, 2  ;;  %s1342_s7 = scalar_lea.sflag [#allocation4], %s1341_s6 }
 0x2f1   : > { %p1577_p3 = pnand %p2545_p13, %p2544_p10 }
 0x2f3   : > { %1989 = dma.done.wait (!%p1577_p3), %s1342_s7, 8192  }
 0x2f4   : > { %1991 = vsyncadd (!%p1577_p3), %s1342_s7, 4294959104  ;;  %p18_p7 = scmp.ge.s32.totalorder %s2097_s27, 4   ;;  %s2546_s15 = smov %s1998_s16 }
 0x2f5   : > { %s2547_s16 = smov %s2002_s17  ;;  %s2548_s17 = smov %s2131_s24 }
 0x2f6   : > { %s2549_s18 = smov %s2097_s27  ;;  %20 = sbr.rel (!%p18_p7) target bundleno = 6 (0x6), region = 85 }
 0x2fd   :  { %1347 = vsyncpa [#allocation3], 1 }
 0x2fe   :  { %1349 = vsyncpa [#allocation3 + $0x1], 1 }
 0x2ff   :  { %1350 = vsyncpa [#allocation6], 1 }
 0x300   :  { %1351 = vsyncpa [#allocation4], 1 }
 0x301   :  { %1353 = vsyncpa [#allocation4 + $0x1], 1 }

</bundles_post_ra>
